<compile_context>
chip_gen: v7x
topology: tpu7x:2x2x1
jax: 0.10.0
libtpu: 0.0.40
codegen_flags: <defaults>
</compile_context>

<pallas_src>
import jax
import jax.numpy as jnp
from jax import lax
from jax.experimental import pallas as pl
from jax.experimental.pallas import tpu as pltpu  # noqa: F401  (TPU backend)


# --------------------------------------------------------------------------
# Kernel 1: node embedding, split into static-channel / mask-channel parts
#   static_emb = sum_c static[..., c] * W_static[c] + b     (computed once)
#   node_emb   = static_emb + sum_k mask_state[..., k] * W_mask[k]
# (channel counts are tiny, so per-channel broadcast FMAs beat padded matmuls)
# --------------------------------------------------------------------------
def _embed_kernel(x_ref, ms_ref, ws_ref, wm_ref, b_ref, semb_ref, nemb_ref):
    B, S, C = x_ref.shape
    H = ws_ref.shape[1]
    semb = jnp.broadcast_to(b_ref[...].reshape(1, 1, H), (B, S, H))
    for c in range(C):                        # static unroll, C is tiny
        semb = semb + x_ref[:, :, c:c + 1] * ws_ref[c:c + 1, :].reshape(1, 1, H)
    semb_ref[...] = semb
    nemb = semb
    for k in range(3):
        nemb = nemb + ms_ref[:, :, k:k + 1] * wm_ref[k:k + 1, :].reshape(1, 1, H)
    nemb_ref[...] = nemb


def embed_nodes(static_t, mask_state, params):
    B, S, C = static_t.shape
    H = params["w_static"].shape[1]
    semb, nemb = pl.pallas_call(
        _embed_kernel,
        out_shape=(jax.ShapeDtypeStruct((B, S, H), jnp.float32),
                   jax.ShapeDtypeStruct((B, S, H), jnp.float32)),
    )(static_t, mask_state, params["w_static"], params["w_mask"], params["b_gnn"])
    return semb, nemb


# --------------------------------------------------------------------------
# Shared GRU cell (torch.nn.GRU semantics) with stacked [r|z|n] gate weights:
# two (rows, H) @ (H, 3H) MXU dots + lane slices.
# --------------------------------------------------------------------------
def _gru_gates(x, h, wih, whh, bih, bhh, H):
    gi = jnp.dot(x, wih, preferred_element_type=jnp.float32) + bih
    gh = jnp.dot(h, whh, preferred_element_type=jnp.float32) + bhh
    r = jax.nn.sigmoid(gi[:, 0 * H:1 * H] + gh[:, 0 * H:1 * H])
    z = jax.nn.sigmoid(gi[:, 1 * H:2 * H] + gh[:, 1 * H:2 * H])
    n = jnp.tanh(gi[:, 2 * H:3 * H] + r * gh[:, 2 * H:3 * H])
    return (1.0 - z) * n + z * h


# --------------------------------------------------------------------------
# Kernel 2: encoder GRU over the whole sequence (single launch, weights and
# hidden state resident in VMEM, statically unrolled time loop).
# --------------------------------------------------------------------------
def _encoder_gru_kernel(x_ref, h0_ref, wih_ref, whh_ref, bih_ref, bhh_ref, ho_ref):
    S = x_ref.shape[0]
    H = h0_ref.shape[-1]
    wih = wih_ref[...]
    whh = whh_ref[...]
    bih = bih_ref[...]
    bhh = bhh_ref[...]
    h = h0_ref[...]
    for t in range(S):                       # static unroll (S is compile-time)
        h = _gru_gates(x_ref[t], h, wih, whh, bih, bhh, H)
    ho_ref[...] = h


def encoder_gru(node_emb, h0, params):
    B, S, H = node_emb.shape
    return pl.pallas_call(
        _encoder_gru_kernel,
        out_shape=jax.ShapeDtypeStruct((B, H), jnp.float32),
    )(jnp.transpose(node_emb, (1, 0, 2)), h0,
      params["gru_wih"], params["gru_whh"], params["gru_bih"], params["gru_bhh"])


# --------------------------------------------------------------------------
# Kernel 3: fully fused decode step (whole batch, single launch per step)
# --------------------------------------------------------------------------
def _decode_step_kernel(node_emb_ref, static_emb_ref, mask_ref, mask_state_ref,
                        dec_h_ref, last_hh_ref, state_emb_ref, target_h_ref,
                        wmask_ref,
                        pwih_ref, pwhh_ref, pbih_ref, pbhh_ref,
                        wa1_ref, wa2e_ref, wa2t_ref, vae_ref, vat_ref,
                        wp1_ref, wp2_ref, wp3_ref, vp_ref,
                        ptr_ref, logp_ref, mask_o_ref, ms_o_ref, nemb_o_ref,
                        dec_o_ref, hh_o_ref):
    B, S, H = node_emb_ref.shape
    node_emb = node_emb_ref[...]
    mask = mask_ref[...]

    # ---- Pointer.gru single step (eval mode: dropout == identity) ----------
    rnn_out = _gru_gates(dec_h_ref[...], last_hh_ref[...],
                         pwih_ref[...], pwhh_ref[...], pbih_ref[...], pbhh_ref[...], H)
    hh_o_ref[...] = rnn_out

    # ---- encoder / target attention (stacked first-stage weights) ----------
    ne_flat = node_emb.reshape(B * S, H)
    a1 = jnp.dot(ne_flat, wa1_ref[...], preferred_element_type=jnp.float32)
    a1 = a1.reshape(B, S, 2 * H)             # [..., :H] -> enc, [..., H:] -> tgt
    q_enc = jnp.dot(rnn_out, wa2e_ref[...], preferred_element_type=jnp.float32)
    q_tgt = jnp.dot(target_h_ref[...], wa2t_ref[...], preferred_element_type=jnp.float32)
    e1_enc = jnp.tanh(a1[:, :, :H] + q_enc[:, None, :])
    e1_tgt = jnp.tanh(a1[:, :, H:] + q_tgt[:, None, :])
    vae = vae_ref[...].reshape(1, 1, H)
    vat = vat_ref[...].reshape(1, 1, H)
    sc_enc = jnp.sum(e1_enc * vae, axis=-1)              # (B, S)
    sc_tgt = jnp.sum(e1_tgt * vat, axis=-1)

    def _softmax(s):
        s = s - jnp.max(s, axis=-1, keepdims=True)
        e = jnp.exp(s)
        return e / jnp.sum(e, axis=-1, keepdims=True)

    attn_enc = _softmax(sc_enc)
    attn_tgt = _softmax(sc_tgt)
    # context = attn @ node_emb as broadcast-mul + sublane reduce (M=1 matmul avoided)
    ctx_enc = jnp.sum(attn_enc[:, :, None] * node_emb, axis=1)   # (B, H)
    ctx_tgt = jnp.sum(attn_tgt[:, :, None] * node_emb, axis=1)

    # ---- pointer energies (W / v shared between both branches, as in torch) ----
    p1 = jnp.dot(ne_flat, wp1_ref[...],
                 preferred_element_type=jnp.float32).reshape(B, S, H)       # shared
    p3 = jnp.dot(state_emb_ref[...], wp3_ref[...],
                 preferred_element_type=jnp.float32)                        # shared
    p2_enc = jnp.dot(ctx_enc, wp2_ref[...], preferred_element_type=jnp.float32)
    p2_tgt = jnp.dot(ctx_tgt, wp2_ref[...], preferred_element_type=jnp.float32)
    vp = vp_ref[...].reshape(1, 1, H)
    probs_enc = jnp.sum(jnp.tanh(p1 + (p2_enc + p3)[:, None, :]) * vp, axis=-1)
    probs_tgt = jnp.sum(jnp.tanh(p1 + (p2_tgt + p3)[:, None, :]) * vp, axis=-1)
    probs_pre = 5.0 * probs_enc + probs_tgt               # (B, S)

    # ---- masked greedy selection (reference: no softmax; logp = log(max)) ----
    masked = jnp.where(mask <= 0.0, -jnp.inf, probs_pre)
    lane = lax.broadcasted_iota(jnp.int32, (B, S), 1)
    flag = mask[:, S - 1:S] <= 0.0                        # (B, 1)
    forced = jnp.where(lane == S - 1, 1.0, 0.0)
    probs = jnp.where(flag, forced, masked)
    pmax = jnp.max(probs, axis=-1, keepdims=True)         # (B, 1)
    ptr = jnp.min(jnp.where(probs == pmax, lane, S), axis=-1, keepdims=True)  # first max
    ptr_ref[...] = ptr
    logp_ref[...] = jnp.log(pmax)          # NaN for negative energies, same as torch

    # ---- stand-in update_fn: mark the chosen node as visited -------------------
    # TODO(synk): update_fn/adj are external callbacks in the reference; only the
    # "chosen node becomes visited" mask update is reproduced here (adj unused).
    onehot = (lane == ptr).astype(jnp.float32)            # (B, S)
    new_mask = jnp.where(onehot > 0.0, 0.0, mask)
    mask_o_ref[...] = new_mask

    # decoder_hidden: reproduces the reference torch.gather index expansion exactly,
    # i.e. node_embedding[b, ptr[b], 0] broadcast over all H channels.
    gathered_row = jnp.sum(onehot[:, :, None] * node_emb, axis=1)   # (B, H)
    dec_o_ref[...] = jnp.broadcast_to(gathered_row[:, 0:1], (B, H))

    # ---- mask_state refresh (no array constants: per-channel selects) -----------
    # flag1=[1,0,0] for mask==1 ; flag2=[0,0,1] for mask in {0,-2} ; flag3=[0,1,0] for mask==3
    m3 = new_mask[:, :, None]                              # (B, S, 1)
    hit1 = m3 == 1.0
    hit2 = jnp.logical_or(m3 == 0.0, m3 == -2.0)
    hit3 = m3 == 3.0
    anyh = jnp.logical_or(hit1, jnp.logical_or(hit2, hit3))
    ms_old = mask_state_ref[...]                           # (B, S, 3)
    c0 = jnp.where(anyh, hit1.astype(jnp.float32), ms_old[:, :, 0:1])
    c1 = jnp.where(anyh, hit3.astype(jnp.float32), ms_old[:, :, 1:2])
    c2 = jnp.where(anyh, hit2.astype(jnp.float32), ms_old[:, :, 2:3])
    ms_o_ref[...] = jnp.concatenate([c0, c1, c2], axis=-1)

    # ---- incremental node-embedding update (3 broadcast FMAs, no K=3 matmul) ----
    wm0 = wmask_ref[0:1, :].reshape(1, 1, H)
    wm1 = wmask_ref[1:2, :].reshape(1, 1, H)
    wm2 = wmask_ref[2:3, :].reshape(1, 1, H)
    nemb_o_ref[...] = (static_emb_ref[...]
                       + c0 * wm0 + c1 * wm1 + c2 * wm2)


def decode_step(node_emb, static_emb, mask, mask_state, dec_h, last_hh,
                state_emb, target_h, params):
    B, S, H = node_emb.shape
    return pl.pallas_call(
        _decode_step_kernel,
        out_shape=(
            jax.ShapeDtypeStruct((B, 1), jnp.int32),       # chosen index
            jax.ShapeDtypeStruct((B, 1), jnp.float32),     # log prob
            jax.ShapeDtypeStruct((B, S), jnp.float32),     # new mask
            jax.ShapeDtypeStruct((B, S, 3), jnp.float32),  # new mask_state
            jax.ShapeDtypeStruct((B, S, H), jnp.float32),  # new node_emb
            jax.ShapeDtypeStruct((B, H), jnp.float32),     # new decoder_hidden
            jax.ShapeDtypeStruct((B, H), jnp.float32),     # new last_hh
        ),
    )(node_emb, static_emb, mask, mask_state, dec_h, last_hh, state_emb, target_h,
      params["w_mask"],
      params["pgru_wih"], params["pgru_whh"], params["pgru_bih"], params["pgru_bhh"],
      params["wa1_stacked"], params["wa2_enc"], params["wa2_tgt"],
      params["va_enc"], params["va_tgt"],
      params["wp1"], params["wp2"], params["wp3"], params["vp"])


# --------------------------------------------------------------------------
# Parameter init (deterministic, synthetic; shapes follow the torch __init__)
# --------------------------------------------------------------------------
def _uniform(k, shape, scale):
    return jax.random.uniform(k, shape, jnp.float32, -scale, scale)


def _xavier(k, shape):
    fan_out, fan_in = shape[-2], shape[-1]
    a = (6.0 / (fan_in + fan_out)) ** 0.5
    return _uniform(k, shape, a)


def init_params(key, static_size, hidden_size):
    H = hidden_size
    C = static_size
    Cin = C + 3
    ks = jax.random.split(key, 20)
    p = {}

    # TODO(synk): DirectedHGNNet is not defined in the reference source; stand-in is a
    # kernel-size-1 Conv1d (per-node linear) embedding split into static/mask weights
    # (adj ignored).
    w_gnn = _xavier(ks[0], (H, Cin)).T                    # (Cin, H)
    p["w_static"] = w_gnn[:C]                             # (C, H)
    p["w_mask"] = w_gnn[C:]                               # (3, H)
    p["b_gnn"] = _uniform(ks[1], (1, H), 1.0 / Cin ** 0.5)

    p["h0"] = _uniform(ks[2], (H,), 1.0 / H ** 0.5)

    def gru_params(k0, k1, k2, k3):
        # torch GRU layout: rows stacked [r; z; n]; pre-transpose -> (H, 3H) for x @ W.
        W_ih = _xavier(k0, (3 * H, H))
        W_hh = _xavier(k1, (3 * H, H))
        b_ih = _uniform(k2, (3 * H,), 1.0 / H ** 0.5)
        b_hh = _uniform(k3, (3 * H,), 1.0 / H ** 0.5)
        return W_ih.T, W_hh.T, b_ih.reshape(1, 3 * H), b_hh.reshape(1, 3 * H)

    (p["gru_wih"], p["gru_whh"], p["gru_bih"], p["gru_bhh"]) = gru_params(
        ks[3], ks[4], ks[5], ks[6])
    (p["pgru_wih"], p["pgru_whh"], p["pgru_bih"], p["pgru_bhh"]) = gru_params(
        ks[7], ks[8], ks[9], ks[10])

    # Pointer.encoder_attn / Pointer.traget_attn: W (1, H, 2H), v (1, 1, H)
    W_enc = _xavier(ks[11], (H, 2 * H))
    wa1_enc, wa2_enc = W_enc[:, :H].T, W_enc[:, H:].T
    p["va_enc"] = _xavier(ks[12], (1, H))
    W_tgt = _xavier(ks[13], (H, 2 * H))
    wa1_tgt, wa2_tgt = W_tgt[:, :H].T, W_tgt[:, H:].T
    p["va_tgt"] = _xavier(ks[14], (1, H))
    p["wa1_stacked"] = jnp.concatenate([wa1_enc, wa1_tgt], axis=1)   # (H, 2H)
    p["wa2_enc"], p["wa2_tgt"] = wa2_enc, wa2_tgt

    # Pointer.W / Pointer.v (shared by both probs and probs_target in the reference)
    W_ptr = _xavier(ks[15], (H, 3 * H))
    p["wp1"], p["wp2"], p["wp3"] = (W_ptr[:, :H].T, W_ptr[:, H:2 * H].T,
                                    W_ptr[:, 2 * H:].T)
    p["vp"] = _xavier(ks[16], (1, H))
    return p


# --------------------------------------------------------------------------
# DRL4TP forward (eval mode, greedy decode) — decode loop runs on-device.
# --------------------------------------------------------------------------
def _make_mask_state(mask, prev):
    # plain-JAX version (outside Pallas) used only for the initial state
    f1 = jnp.array([1.0, 0.0, 0.0], jnp.float32)
    f2 = jnp.array([0.0, 0.0, 1.0], jnp.float32)
    f3 = jnp.array([0.0, 1.0, 0.0], jnp.float32)
    m = mask[..., None]
    ms = prev
    ms = jnp.where(m == 1.0, f1, ms)
    ms = jnp.where(m == 0.0, f2, ms)
    ms = jnp.where(m == 3.0, f3, ms)
    ms = jnp.where(m == -2.0, f2, ms)
    return ms


def _forward_impl(static, params, max_steps):
    B, C, S = static.shape
    H = params["h0"].shape[0]
    static_t = jnp.transpose(static, (0, 2, 1))                    # [B, S, C]

    mask0 = jnp.ones((B, S), jnp.float32).at[:, 0].set(-2.0)
    mask_state0 = _make_mask_state(mask0, jnp.zeros((B, S, 3), jnp.float32))

    static_emb, node_emb0 = embed_nodes(static_t, mask_state0, params)
    state_emb = jnp.mean(node_emb0, axis=1)                        # [B, H] (loop-invariant)
    dec_h0 = node_emb0[:, 0, :]
    target_h = node_emb0[:, S - 1, :]
    last_hh0 = encoder_gru(
        node_emb0, jnp.broadcast_to(params["h0"][None, :], (B, H)), params)

    idx_buf0 = jnp.zeros((B, max_steps), jnp.int32)
    logp_buf0 = jnp.zeros((B, max_steps), jnp.float32)

    def cond_fn(carry):
        step, mask = carry[0], carry[1]
        check = mask[:, -1]
        return jnp.logical_and(
            step < max_steps,
            jnp.any(jnp.logical_or(check == 1.0, check == 3.0)))

    def body_fn(carry):
        step, mask, mask_state, node_emb, dec_h, last_hh, idx_buf, logp_buf = carry
        ptr, logp, mask, mask_state, node_emb, dec_h, last_hh = decode_step(
            node_emb, static_emb, mask, mask_state, dec_h, last_hh,
            state_emb, target_h, params)
        idx_buf = lax.dynamic_update_slice(idx_buf, ptr, (0, step))
        logp_buf = lax.dynamic_update_slice(logp_buf, logp, (0, step))
        return (step + 1, mask, mask_state, node_emb, dec_h, last_hh,
                idx_buf, logp_buf)

    init = (jnp.int32(0), mask0, mask_state0, node_emb0, dec_h0, last_hh0,
            idx_buf0, logp_buf0)
    step, mask, _, _, _, _, idx_buf, logp_buf = lax.while_loop(cond_fn, body_fn, init)
    return idx_buf, logp_buf, mask, step


_forward_jit = jax.jit(_forward_impl, static_argnames=("max_steps",))


def drl4tp_forward(static, weight, params, max_steps=None):
    # static: [B, C, S] (NCL, like the PyTorch module).
    # TODO(synk): `weight` only feeds the external update_fn callback in the reference;
    # the stand-in mask update does not use it.
    del weight
    B, C, S = static.shape
    if max_steps is None:
        max_steps = 2 * S          # reference caps at 1000; termination is data-driven
    idx_buf, logp_buf, mask, nsteps = _forward_jit(static, params, max_steps=max_steps)
    n = int(nsteps)                # single device->host sync after the whole decode
    return idx_buf[:, :n], logp_buf[:, :n], mask


# --------------------------------------------------------------------------
if __name__ == "__main__":
    B, static_size, S, H = 2, 2, 8, 32
    key = jax.random.PRNGKey(0)
    kp, kx, kw = jax.random.split(key, 3)

    params = init_params(kp, static_size, H)
    static = jax.random.uniform(kx, (B, static_size, S), jnp.float32)   # NCL like torch
    weight = jax.random.uniform(kw, (B, S, S), jnp.float32)             # edge weights for update_fn

    tour_idx, tour_logp, mask = drl4tp_forward(static, weight, params)
    jax.block_until_ready((tour_idx, tour_logp, mask))
    print("KERNEL_OK")
</pallas_src>

<mosaic_0001>
module attributes {stable_mosaic.version = 11 : i64} {
  func.func @_embed_kernel(%arg0: memref<2x8x2xf32, #tpu.memory_space<vmem>>, %arg1: memref<2x8x3xf32, #tpu.memory_space<vmem>>, %arg2: memref<2x32xf32, #tpu.memory_space<vmem>>, %arg3: memref<3x32xf32, #tpu.memory_space<vmem>>, %arg4: memref<1x32xf32, #tpu.memory_space<vmem>>, %arg5: memref<2x8x32xf32, #tpu.memory_space<vmem>>, %arg6: memref<2x8x32xf32, #tpu.memory_space<vmem>>) attributes {dimension_semantics = [], scalar_prefetch = 0 : i64, scratch_operands = 0 : i64, tpu.core_type = #tpu.core_type<tc>} {
    %c0 = arith.constant 0 : index
    %c0_0 = arith.constant 0 : index
    %0 = vector.load %arg4[%c0, %c0_0] : memref<1x32xf32, #tpu.memory_space<vmem>>, vector<1x32xf32>
    %1 = vector.shape_cast %0 : vector<1x32xf32> to vector<1x1x32xf32>
    %2 = vector.shape_cast %1 : vector<1x1x32xf32> to vector<1x1x32xf32>
    %3 = vector.broadcast %2 : vector<1x1x32xf32> to vector<2x8x32xf32>
    %c0_1 = arith.constant 0 : index
    %c0_2 = arith.constant 0 : index
    %c0_3 = arith.constant 0 : index
    %4 = vector.load %arg0[%c0_1, %c0_2, %c0_3] : memref<2x8x2xf32, #tpu.memory_space<vmem>>, vector<2x8x1xf32>
    %c0_4 = arith.constant 0 : index
    %c0_5 = arith.constant 0 : index
    %5 = vector.load %arg2[%c0_4, %c0_5] : memref<2x32xf32, #tpu.memory_space<vmem>>, vector<1x32xf32>
    %6 = vector.shape_cast %5 : vector<1x32xf32> to vector<1x1x32xf32>
    %7 = vector.broadcast %4 : vector<2x8x1xf32> to vector<2x8x32xf32>
    %8 = vector.broadcast %6 : vector<1x1x32xf32> to vector<2x8x32xf32>
    %9 = arith.mulf %7, %8 : vector<2x8x32xf32>
    %10 = arith.addf %3, %9 : vector<2x8x32xf32>
    %c0_6 = arith.constant 0 : index
    %c0_7 = arith.constant 0 : index
    %c1 = arith.constant 1 : index
    %11 = vector.load %arg0[%c0_6, %c0_7, %c1] : memref<2x8x2xf32, #tpu.memory_space<vmem>>, vector<2x8x1xf32>
    %c1_8 = arith.constant 1 : index
    %c0_9 = arith.constant 0 : index
    %12 = vector.load %arg2[%c1_8, %c0_9] : memref<2x32xf32, #tpu.memory_space<vmem>>, vector<1x32xf32>
    %13 = vector.shape_cast %12 : vector<1x32xf32> to vector<1x1x32xf32>
    %14 = vector.broadcast %11 : vector<2x8x1xf32> to vector<2x8x32xf32>
    %15 = vector.broadcast %13 : vector<1x1x32xf32> to vector<2x8x32xf32>
    %16 = arith.mulf %14, %15 : vector<2x8x32xf32>
    %17 = arith.addf %10, %16 : vector<2x8x32xf32>
    %c0_10 = arith.constant 0 : index
    %c0_11 = arith.constant 0 : index
    %c0_12 = arith.constant 0 : index
    %18 = vector.load %arg5[%c0_10, %c0_11, %c0_12] : memref<2x8x32xf32, #tpu.memory_space<vmem>>, vector<2x8x32xf32>
    tpu.vector_store %arg5[%c0_10, %c0_11, %c0_12], %17 {strides = array<i32>} : memref<2x8x32xf32, #tpu.memory_space<vmem>>, vector<2x8x32xf32>,
    %c0_13 = arith.constant 0 : index
    %c0_14 = arith.constant 0 : index
    %c0_15 = arith.constant 0 : index
    %19 = vector.load %arg1[%c0_13, %c0_14, %c0_15] : memref<2x8x3xf32, #tpu.memory_space<vmem>>, vector<2x8x1xf32>
    %c0_16 = arith.constant 0 : index
    %c0_17 = arith.constant 0 : index
    %20 = vector.load %arg3[%c0_16, %c0_17] : memref<3x32xf32, #tpu.memory_space<vmem>>, vector<1x32xf32>
    %21 = vector.shape_cast %20 : vector<1x32xf32> to vector<1x1x32xf32>
    %22 = vector.broadcast %19 : vector<2x8x1xf32> to vector<2x8x32xf32>
    %23 = vector.broadcast %21 : vector<1x1x32xf32> to vector<2x8x32xf32>
    %24 = arith.mulf %22, %23 : vector<2x8x32xf32>
    %25 = arith.addf %17, %24 : vector<2x8x32xf32>
    %c0_18 = arith.constant 0 : index
    %c0_19 = arith.constant 0 : index
    %c1_20 = arith.constant 1 : index
    %26 = vector.load %arg1[%c0_18, %c0_19, %c1_20] : memref<2x8x3xf32, #tpu.memory_space<vmem>>, vector<2x8x1xf32>
    %c1_21 = arith.constant 1 : index
    %c0_22 = arith.constant 0 : index
    %27 = vector.load %arg3[%c1_21, %c0_22] : memref<3x32xf32, #tpu.memory_space<vmem>>, vector<1x32xf32>
    %28 = vector.shape_cast %27 : vector<1x32xf32> to vector<1x1x32xf32>
    %29 = vector.broadcast %26 : vector<2x8x1xf32> to vector<2x8x32xf32>
    %30 = vector.broadcast %28 : vector<1x1x32xf32> to vector<2x8x32xf32>
    %31 = arith.mulf %29, %30 : vector<2x8x32xf32>
    %32 = arith.addf %25, %31 : vector<2x8x32xf32>
    %c0_23 = arith.constant 0 : index
    %c0_24 = arith.constant 0 : index
    %c2 = arith.constant 2 : index
    %33 = vector.load %arg1[%c0_23, %c0_24, %c2] : memref<2x8x3xf32, #tpu.memory_space<vmem>>, vector<2x8x1xf32>
    %c2_25 = arith.constant 2 : index
    %c0_26 = arith.constant 0 : index
    %34 = vector.load %arg3[%c2_25, %c0_26] : memref<3x32xf32, #tpu.memory_space<vmem>>, vector<1x32xf32>
    %35 = vector.shape_cast %34 : vector<1x32xf32> to vector<1x1x32xf32>
    %36 = vector.broadcast %33 : vector<2x8x1xf32> to vector<2x8x32xf32>
    %37 = vector.broadcast %35 : vector<1x1x32xf32> to vector<2x8x32xf32>
    %38 = arith.mulf %36, %37 : vector<2x8x32xf32>
    %39 = arith.addf %32, %38 : vector<2x8x32xf32>
    %c0_27 = arith.constant 0 : index
    %c0_28 = arith.constant 0 : index
    %c0_29 = arith.constant 0 : index
    %40 = vector.load %arg6[%c0_27, %c0_28, %c0_29] : memref<2x8x32xf32, #tpu.memory_space<vmem>>, vector<2x8x32xf32>
    tpu.vector_store %arg6[%c0_27, %c0_28, %c0_29], %39 {strides = array<i32>} : memref<2x8x32xf32, #tpu.memory_space<vmem>>, vector<2x8x32xf32>,
    return
  }
}

module attributes {stable_mosaic.version = 11 : i64} {
  func.func @_encoder_gru_kernel(%arg0: memref<8x2x32xf32, #tpu.memory_space<vmem>>, %arg1: memref<2x32xf32, #tpu.memory_space<vmem>>, %arg2: memref<32x96xf32, #tpu.memory_space<vmem>>, %arg3: memref<32x96xf32, #tpu.memory_space<vmem>>, %arg4: memref<1x96xf32, #tpu.memory_space<vmem>>, %arg5: memref<1x96xf32, #tpu.memory_space<vmem>>, %arg6: memref<2x32xf32, #tpu.memory_space<vmem>>) attributes {dimension_semantics = [], scalar_prefetch = 0 : i64, scratch_operands = 0 : i64, tpu.core_type = #tpu.core_type<tc>} {
    %c0 = arith.constant 0 : index
    %c0_0 = arith.constant 0 : index
    %0 = vector.load %arg2[%c0, %c0_0] : memref<32x96xf32, #tpu.memory_space<vmem>>, vector<32x96xf32>
    %c0_1 = arith.constant 0 : index
    %c0_2 = arith.constant 0 : index
    %1 = vector.load %arg3[%c0_1, %c0_2] : memref<32x96xf32, #tpu.memory_space<vmem>>, vector<32x96xf32>
    %c0_3 = arith.constant 0 : index
    %c0_4 = arith.constant 0 : index
    %2 = vector.load %arg4[%c0_3, %c0_4] : memref<1x96xf32, #tpu.memory_space<vmem>>, vector<1x96xf32>
    %c0_5 = arith.constant 0 : index
    %c0_6 = arith.constant 0 : index
    %3 = vector.load %arg5[%c0_5, %c0_6] : memref<1x96xf32, #tpu.memory_space<vmem>>, vector<1x96xf32>
    %c0_7 = arith.constant 0 : index
    %c0_8 = arith.constant 0 : index
    %4 = vector.load %arg1[%c0_7, %c0_8] : memref<2x32xf32, #tpu.memory_space<vmem>>, vector<2x32xf32>
    %c0_9 = arith.constant 0 : index
    %c0_10 = arith.constant 0 : index
    %c0_11 = arith.constant 0 : index
    %5 = vector.load %arg0[%c0_9, %c0_10, %c0_11] : memref<8x2x32xf32, #tpu.memory_space<vmem>>, vector<1x2x32xf32>
    %6 = vector.shape_cast %5 : vector<1x2x32xf32> to vector<2x32xf32>
    %cst = arith.constant dense<0.000000e+00> : vector<2x96xf32>
    %7 = tpu.matmul %6, %0, %cst {dimension_numbers = #tpu.dot_dimension_numbers<[1], [0], [0], [1], [0, 0, 1, 1], [], []>} : vector<2x32xf32>, vector<32x96xf32>, vector<2x96xf32> -> vector<2x96xf32>
    %8 = vector.broadcast %2 : vector<1x96xf32> to vector<2x96xf32>
    %9 = arith.addf %7, %8 : vector<2x96xf32>
    %cst_12 = arith.constant dense<0.000000e+00> : vector<2x96xf32>
    %10 = tpu.matmul %4, %1, %cst_12 {dimension_numbers = #tpu.dot_dimension_numbers<[1], [0], [0], [1], [0, 0, 1, 1], [], []>} : vector<2x32xf32>, vector<32x96xf32>, vector<2x96xf32> -> vector<2x96xf32>
    %11 = vector.broadcast %3 : vector<1x96xf32> to vector<2x96xf32>
    %12 = arith.addf %10, %11 : vector<2x96xf32>
    %13 = vector.extract_strided_slice %9 {offsets = [0, 0], sizes = [2, 32], strides = [1, 1]} : vector<2x96xf32> to vector<2x32xf32>
    %14 = vector.extract_strided_slice %12 {offsets = [0, 0], sizes = [2, 32], strides = [1, 1]} : vector<2x96xf32> to vector<2x32xf32>
    %15 = arith.addf %13, %14 : vector<2x32xf32>
    %16 = arith.negf %15 : vector<2x32xf32>
    %17 = math.exp %16 : vector<2x32xf32>
    %cst_13 = arith.constant 1.000000e+00 : f32
    %18 = vector.broadcast %cst_13 : f32 to vector<2x32xf32>
    %19 = arith.addf %18, %17 : vector<2x32xf32>
    %20 = arith.divf %18, %19 : vector<2x32xf32>
    %21 = vector.extract_strided_slice %9 {offsets = [0, 32], sizes = [2, 32], strides = [1, 1]} : vector<2x96xf32> to vector<2x32xf32>
    %22 = vector.extract_strided_slice %12 {offsets = [0, 32], sizes = [2, 32], strides = [1, 1]} : vector<2x96xf32> to vector<2x32xf32>
    %23 = arith.addf %21, %22 : vector<2x32xf32>
    %24 = arith.negf %23 : vector<2x32xf32>
    %25 = math.exp %24 : vector<2x32xf32>
    %cst_14 = arith.constant 1.000000e+00 : f32
    %26 = vector.broadcast %cst_14 : f32 to vector<2x32xf32>
    %27 = arith.addf %26, %25 : vector<2x32xf32>
    %28 = arith.divf %26, %27 : vector<2x32xf32>
    %29 = vector.extract_strided_slice %9 {offsets = [0, 64], sizes = [2, 32], strides = [1, 1]} : vector<2x96xf32> to vector<2x32xf32>
    %30 = vector.extract_strided_slice %12 {offsets = [0, 64], sizes = [2, 32], strides = [1, 1]} : vector<2x96xf32> to vector<2x32xf32>
    %31 = arith.mulf %20, %30 : vector<2x32xf32>
    %32 = arith.addf %29, %31 : vector<2x32xf32>
    %33 = math.tanh %32 : vector<2x32xf32>
    %cst_15 = arith.constant 1.000000e+00 : f32
    %34 = vector.broadcast %cst_15 : f32 to vector<2x32xf32>
    %35 = arith.subf %34, %28 : vector<2x32xf32>
    %36 = arith.mulf %35, %33 : vector<2x32xf32>
    %37 = arith.mulf %28, %4 : vector<2x32xf32>
    %38 = arith.addf %36, %37 : vector<2x32xf32>
    %c1 = arith.constant 1 : index
    %c0_16 = arith.constant 0 : index
    %c0_17 = arith.constant 0 : index
    %39 = vector.load %arg0[%c1, %c0_16, %c0_17] : memref<8x2x32xf32, #tpu.memory_space<vmem>>, vector<1x2x32xf32>
    %40 = vector.shape_cast %39 : vector<1x2x32xf32> to vector<2x32xf32>
    %cst_18 = arith.constant dense<0.000000e+00> : vector<2x96xf32>
    %41 = tpu.matmul %40, %0, %cst_18 {dimension_numbers = #tpu.dot_dimension_numbers<[1], [0], [0], [1], [0, 0, 1, 1], [], []>} : vector<2x32xf32>, vector<32x96xf32>, vector<2x96xf32> -> vector<2x96xf32>
    %42 = vector.broadcast %2 : vector<1x96xf32> to vector<2x96xf32>
    %43 = arith.addf %41, %42 : vector<2x96xf32>
    %cst_19 = arith.constant dense<0.000000e+00> : vector<2x96xf32>
    %44 = tpu.matmul %38, %1, %cst_19 {dimension_numbers = #tpu.dot_dimension_numbers<[1], [0], [0], [1], [0, 0, 1, 1], [], []>} : vector<2x32xf32>, vector<32x96xf32>, vector<2x96xf32> -> vector<2x96xf32>
    %45 = vector.broadcast %3 : vector<1x96xf32> to vector<2x96xf32>
    %46 = arith.addf %44, %45 : vector<2x96xf32>
    %47 = vector.extract_strided_slice %43 {offsets = [0, 0], sizes = [2, 32], strides = [1, 1]} : vector<2x96xf32> to vector<2x32xf32>
    %48 = vector.extract_strided_slice %46 {offsets = [0, 0], sizes = [2, 32], strides = [1, 1]} : vector<2x96xf32> to vector<2x32xf32>
    %49 = arith.addf %47, %48 : vector<2x32xf32>
    %50 = arith.negf %49 : vector<2x32xf32>
    %51 = math.exp %50 : vector<2x32xf32>
    %cst_20 = arith.constant 1.000000e+00 : f32
    %52 = vector.broadcast %cst_20 : f32 to vector<2x32xf32>
    %53 = arith.addf %52, %51 : vector<2x32xf32>
    %54 = arith.divf %52, %53 : vector<2x32xf32>
    %55 = vector.extract_strided_slice %43 {offsets = [0, 32], sizes = [2, 32], strides = [1, 1]} : vector<2x96xf32> to vector<2x32xf32>
    %56 = vector.extract_strided_slice %46 {offsets = [0, 32], sizes = [2, 32], strides = [1, 1]} : vector<2x96xf32> to vector<2x32xf32>
    %57 = arith.addf %55, %56 : vector<2x32xf32>
    %58 = arith.negf %57 : vector<2x32xf32>
    %59 = math.exp %58 : vector<2x32xf32>
    %cst_21 = arith.constant 1.000000e+00 : f32
    %60 = vector.broadcast %cst_21 : f32 to vector<2x32xf32>
    %61 = arith.addf %60, %59 : vector<2x32xf32>
    %62 = arith.divf %60, %61 : vector<2x32xf32>
    %63 = vector.extract_strided_slice %43 {offsets = [0, 64], sizes = [2, 32], strides = [1, 1]} : vector<2x96xf32> to vector<2x32xf32>
    %64 = vector.extract_strided_slice %46 {offsets = [0, 64], sizes = [2, 32], strides = [1, 1]} : vector<2x96xf32> to vector<2x32xf32>
    %65 = arith.mulf %54, %64 : vector<2x32xf32>
    %66 = arith.addf %63, %65 : vector<2x32xf32>
    %67 = math.tanh %66 : vector<2x32xf32>
    %cst_22 = arith.constant 1.000000e+00 : f32
    %68 = vector.broadcast %cst_22 : f32 to vector<2x32xf32>
    %69 = arith.subf %68, %62 : vector<2x32xf32>
    %70 = arith.mulf %69, %67 : vector<2x32xf32>
    %71 = arith.mulf %62, %38 : vector<2x32xf32>
    %72 = arith.addf %70, %71 : vector<2x32xf32>
    %c2 = arith.constant 2 : index
    %c0_23 = arith.constant 0 : index
    %c0_24 = arith.constant 0 : index
    %73 = vector.load %arg0[%c2, %c0_23, %c0_24] : memref<8x2x32xf32, #tpu.memory_space<vmem>>, vector<1x2x32xf32>
    %74 = vector.shape_cast %73 : vector<1x2x32xf32> to vector<2x32xf32>
    %cst_25 = arith.constant dense<0.000000e+00> : vector<2x96xf32>
    %75 = tpu.matmul %74, %0, %cst_25 {dimension_numbers = #tpu.dot_dimension_numbers<[1], [0], [0], [1], [0, 0, 1, 1], [], []>} : vector<2x32xf32>, vector<32x96xf32>, vector<2x96xf32> -> vector<2x96xf32>
    %76 = vector.broadcast %2 : vector<1x96xf32> to vector<2x96xf32>
    %77 = arith.addf %75, %76 : vector<2x96xf32>
    %cst_26 = arith.constant dense<0.000000e+00> : vector<2x96xf32>
    %78 = tpu.matmul %72, %1, %cst_26 {dimension_numbers = #tpu.dot_dimension_numbers<[1], [0], [0], [1], [0, 0, 1, 1], [], []>} : vector<2x32xf32>, vector<32x96xf32>, vector<2x96xf32> -> vector<2x96xf32>
    %79 = vector.broadcast %3 : vector<1x96xf32> to vector<2x96xf32>
    %80 = arith.addf %78, %79 : vector<2x96xf32>
    %81 = vector.extract_strided_slice %77 {offsets = [0, 0], sizes = [2, 32], strides = [1, 1]} : vector<2x96xf32> to vector<2x32xf32>
    %82 = vector.extract_strided_slice %80 {offsets = [0, 0], sizes = [2, 32], strides = [1, 1]} : vector<2x96xf32> to vector<2x32xf32>
    %83 = arith.addf %81, %82 : vector<2x32xf32>
    %84 = arith.negf %83 : vector<2x32xf32>
    %85 = math.exp %84 : vector<2x32xf32>
    %cst_27 = arith.constant 1.000000e+00 : f32
    %86 = vector.broadcast %cst_27 : f32 to vector<2x32xf32>
    %87 = arith.addf %86, %85 : vector<2x32xf32>
    %88 = arith.divf %86, %87 : vector<2x32xf32>
    %89 = vector.extract_strided_slice %77 {offsets = [0, 32], sizes = [2, 32], strides = [1, 1]} : vector<2x96xf32> to vector<2x32xf32>
    %90 = vector.extract_strided_slice %80 {offsets = [0, 32], sizes = [2, 32], strides = [1, 1]} : vector<2x96xf32> to vector<2x32xf32>
    %91 = arith.addf %89, %90 : vector<2x32xf32>
    %92 = arith.negf %91 : vector<2x32xf32>
    %93 = math.exp %92 : vector<2x32xf32>
    %cst_28 = arith.constant 1.000000e+00 : f32
    %94 = vector.broadcast %cst_28 : f32 to vector<2x32xf32>
    %95 = arith.addf %94, %93 : vector<2x32xf32>
    %96 = arith.divf %94, %95 : vector<2x32xf32>
    %97 = vector.extract_strided_slice %77 {offsets = [0, 64], sizes = [2, 32], strides = [1, 1]} : vector<2x96xf32> to vector<2x32xf32>
    %98 = vector.extract_strided_slice %80 {offsets = [0, 64], sizes = [2, 32], strides = [1, 1]} : vector<2x96xf32> to vector<2x32xf32>
    %99 = arith.mulf %88, %98 : vector<2x32xf32>
    %100 = arith.addf %97, %99 : vector<2x32xf32>
    %101 = math.tanh %100 : vector<2x32xf32>
    %cst_29 = arith.constant 1.000000e+00 : f32
    %102 = vector.broadcast %cst_29 : f32 to vector<2x32xf32>
    %103 = arith.subf %102, %96 : vector<2x32xf32>
    %104 = arith.mulf %103, %101 : vector<2x32xf32>
    %105 = arith.mulf %96, %72 : vector<2x32xf32>
    %106 = arith.addf %104, %105 : vector<2x32xf32>
    %c3 = arith.constant 3 : index
    %c0_30 = arith.constant 0 : index
    %c0_31 = arith.constant 0 : index
    %107 = vector.load %arg0[%c3, %c0_30, %c0_31] : memref<8x2x32xf32, #tpu.memory_space<vmem>>, vector<1x2x32xf32>
    %108 = vector.shape_cast %107 : vector<1x2x32xf32> to vector<2x32xf32>
    %cst_32 = arith.constant dense<0.000000e+00> : vector<2x96xf32>
    %109 = tpu.matmul %108, %0, %cst_32 {dimension_numbers = #tpu.dot_dimension_numbers<[1], [0], [0], [1], [0, 0, 1, 1], [], []>} : vector<2x32xf32>, vector<32x96xf32>, vector<2x96xf32> -> vector<2x96xf32>
    %110 = vector.broadcast %2 : vector<1x96xf32> to vector<2x96xf32>
    %111 = arith.addf %109, %110 : vector<2x96xf32>
    %cst_33 = arith.constant dense<0.000000e+00> : vector<2x96xf32>
    %112 = tpu.matmul %106, %1, %cst_33 {dimension_numbers = #tpu.dot_dimension_numbers<[1], [0], [0], [1], [0, 0, 1, 1], [], []>} : vector<2x32xf32>, vector<32x96xf32>, vector<2x96xf32> -> vector<2x96xf32>
    %113 = vector.broadcast %3 : vector<1x96xf32> to vector<2x96xf32>
    %114 = arith.addf %112, %113 : vector<2x96xf32>
    %115 = vector.extract_strided_slice %111 {offsets = [0, 0], sizes = [2, 32], strides = [1, 1]} : vector<2x96xf32> to vector<2x32xf32>
    %116 = vector.extract_strided_slice %114 {offsets = [0, 0], sizes = [2, 32], strides = [1, 1]} : vector<2x96xf32> to vector<2x32xf32>
    %117 = arith.addf %115, %116 : vector<2x32xf32>
    %118 = arith.negf %117 : vector<2x32xf32>
    %119 = math.exp %118 : vector<2x32xf32>
    %cst_34 = arith.constant 1.000000e+00 : f32
    %120 = vector.broadcast %cst_34 : f32 to vector<2x32xf32>
    %121 = arith.addf %120, %119 : vector<2x32xf32>
    %122 = arith.divf %120, %121 : vector<2x32xf32>
    %123 = vector.extract_strided_slice %111 {offsets = [0, 32], sizes = [2, 32], strides = [1, 1]} : vector<2x96xf32> to vector<2x32xf32>
    %124 = vector.extract_strided_slice %114 {offsets = [0, 32], sizes = [2, 32], strides = [1, 1]} : vector<2x96xf32> to vector<2x32xf32>
    %125 = arith.addf %123, %124 : vector<2x32xf32>
    %126 = arith.negf %125 : vector<2x32xf32>
    %127 = math.exp %126 : vector<2x32xf32>
    %cst_35 = arith.constant 1.000000e+00 : f32
    %128 = vector.broadcast %cst_35 : f32 to vector<2x32xf32>
    %129 = arith.addf %128, %127 : vector<2x32xf32>
    %130 = arith.divf %128, %129 : vector<2x32xf32>
    %131 = vector.extract_strided_slice %111 {offsets = [0, 64], sizes = [2, 32], strides = [1, 1]} : vector<2x96xf32> to vector<2x32xf32>
    %132 = vector.extract_strided_slice %114 {offsets = [0, 64], sizes = [2, 32], strides = [1, 1]} : vector<2x96xf32> to vector<2x32xf32>
    %133 = arith.mulf %122, %132 : vector<2x32xf32>
    %134 = arith.addf %131, %133 : vector<2x32xf32>
    %135 = math.tanh %134 : vector<2x32xf32>
    %cst_36 = arith.constant 1.000000e+00 : f32
    %136 = vector.broadcast %cst_36 : f32 to vector<2x32xf32>
    %137 = arith.subf %136, %130 : vector<2x32xf32>
    %138 = arith.mulf %137, %135 : vector<2x32xf32>
    %139 = arith.mulf %130, %106 : vector<2x32xf32>
    %140 = arith.addf %138, %139 : vector<2x32xf32>
    %c4 = arith.constant 4 : index
    %c0_37 = arith.constant 0 : index
    %c0_38 = arith.constant 0 : index
    %141 = vector.load %arg0[%c4, %c0_37, %c0_38] : memref<8x2x32xf32, #tpu.memory_space<vmem>>, vector<1x2x32xf32>
    %142 = vector.shape_cast %141 : vector<1x2x32xf32> to vector<2x32xf32>
    %cst_39 = arith.constant dense<0.000000e+00> : vector<2x96xf32>
    %143 = tpu.matmul %142, %0, %cst_39 {dimension_numbers = #tpu.dot_dimension_numbers<[1], [0], [0], [1], [0, 0, 1, 1], [], []>} : vector<2x32xf32>, vector<32x96xf32>, vector<2x96xf32> -> vector<2x96xf32>
    %144 = vector.broadcast %2 : vector<1x96xf32> to vector<2x96xf32>
    %145 = arith.addf %143, %144 : vector<2x96xf32>
    %cst_40 = arith.constant dense<0.000000e+00> : vector<2x96xf32>
    %146 = tpu.matmul %140, %1, %cst_40 {dimension_numbers = #tpu.dot_dimension_numbers<[1], [0], [0], [1], [0, 0, 1, 1], [], []>} : vector<2x32xf32>, vector<32x96xf32>, vector<2x96xf32> -> vector<2x96xf32>
    %147 = vector.broadcast %3 : vector<1x96xf32> to vector<2x96xf32>
    %148 = arith.addf %146, %147 : vector<2x96xf32>
    %149 = vector.extract_strided_slice %145 {offsets = [0, 0], sizes = [2, 32], strides = [1, 1]} : vector<2x96xf32> to vector<2x32xf32>
    %150 = vector.extract_strided_slice %148 {offsets = [0, 0], sizes = [2, 32], strides = [1, 1]} : vector<2x96xf32> to vector<2x32xf32>
    %151 = arith.addf %149, %150 : vector<2x32xf32>
    %152 = arith.negf %151 : vector<2x32xf32>
    %153 = math.exp %152 : vector<2x32xf32>
    %cst_41 = arith.constant 1.000000e+00 : f32
    %154 = vector.broadcast %cst_41 : f32 to vector<2x32xf32>
    %155 = arith.addf %154, %153 : vector<2x32xf32>
    %156 = arith.divf %154, %155 : vector<2x32xf32>
    %157 = vector.extract_strided_slice %145 {offsets = [0, 32], sizes = [2, 32], strides = [1, 1]} : vector<2x96xf32> to vector<2x32xf32>
    %158 = vector.extract_strided_slice %148 {offsets = [0, 32], sizes = [2, 32], strides = [1, 1]} : vector<2x96xf32> to vector<2x32xf32>
    %159 = arith.addf %157, %158 : vector<2x32xf32>
    %160 = arith.negf %159 : vector<2x32xf32>
    %161 = math.exp %160 : vector<2x32xf32>
    %cst_42 = arith.constant 1.000000e+00 : f32
    %162 = vector.broadcast %cst_42 : f32 to vector<2x32xf32>
    %163 = arith.addf %162, %161 : vector<2x32xf32>
    %164 = arith.divf %162, %163 : vector<2x32xf32>
    %165 = vector.extract_strided_slice %145 {offsets = [0, 64], sizes = [2, 32], strides = [1, 1]} : vector<2x96xf32> to vector<2x32xf32>
    %166 = vector.extract_strided_slice %148 {offsets = [0, 64], sizes = [2, 32], strides = [1, 1]} : vector<2x96xf32> to vector<2x32xf32>
    %167 = arith.mulf %156, %166 : vector<2x32xf32>
    %168 = arith.addf %165, %167 : vector<2x32xf32>
    %169 = math.tanh %168 : vector<2x32xf32>
    %cst_43 = arith.constant 1.000000e+00 : f32
    %170 = vector.broadcast %cst_43 : f32 to vector<2x32xf32>
    %171 = arith.subf %170, %164 : vector<2x32xf32>
    %172 = arith.mulf %171, %169 : vector<2x32xf32>
    %173 = arith.mulf %164, %140 : vector<2x32xf32>
    %174 = arith.addf %172, %173 : vector<2x32xf32>
    %c5 = arith.constant 5 : index
    %c0_44 = arith.constant 0 : index
    %c0_45 = arith.constant 0 : index
    %175 = vector.load %arg0[%c5, %c0_44, %c0_45] : memref<8x2x32xf32, #tpu.memory_space<vmem>>, vector<1x2x32xf32>
    %176 = vector.shape_cast %175 : vector<1x2x32xf32> to vector<2x32xf32>
    %cst_46 = arith.constant dense<0.000000e+00> : vector<2x96xf32>
    %177 = tpu.matmul %176, %0, %cst_46 {dimension_numbers = #tpu.dot_dimension_numbers<[1], [0], [0], [1], [0, 0, 1, 1], [], []>} : vector<2x32xf32>, vector<32x96xf32>, vector<2x96xf32> -> vector<2x96xf32>
    %178 = vector.broadcast %2 : vector<1x96xf32> to vector<2x96xf32>
    %179 = arith.addf %177, %178 : vector<2x96xf32>
    %cst_47 = arith.constant dense<0.000000e+00> : vector<2x96xf32>
    %180 = tpu.matmul %174, %1, %cst_47 {dimension_numbers = #tpu.dot_dimension_numbers<[1], [0], [0], [1], [0, 0, 1, 1], [], []>} : vector<2x32xf32>, vector<32x96xf32>, vector<2x96xf32> -> vector<2x96xf32>
    %181 = vector.broadcast %3 : vector<1x96xf32> to vector<2x96xf32>
    %182 = arith.addf %180, %181 : vector<2x96xf32>
    %183 = vector.extract_strided_slice %179 {offsets = [0, 0], sizes = [2, 32], strides = [1, 1]} : vector<2x96xf32> to vector<2x32xf32>
    %184 = vector.extract_strided_slice %182 {offsets = [0, 0], sizes = [2, 32], strides = [1, 1]} : vector<2x96xf32> to vector<2x32xf32>
    %185 = arith.addf %183, %184 : vector<2x32xf32>
    %186 = arith.negf %185 : vector<2x32xf32>
    %187 = math.exp %186 : vector<2x32xf32>
    %cst_48 = arith.constant 1.000000e+00 : f32
    %188 = vector.broadcast %cst_48 : f32 to vector<2x32xf32>
    %189 = arith.addf %188, %187 : vector<2x32xf32>
    %190 = arith.divf %188, %189 : vector<2x32xf32>
    %191 = vector.extract_strided_slice %179 {offsets = [0, 32], sizes = [2, 32], strides = [1, 1]} : vector<2x96xf32> to vector<2x32xf32>
    %192 = vector.extract_strided_slice %182 {offsets = [0, 32], sizes = [2, 32], strides = [1, 1]} : vector<2x96xf32> to vector<2x32xf32>
    %193 = arith.addf %191, %192 : vector<2x32xf32>
    %194 = arith.negf %193 : vector<2x32xf32>
    %195 = math.exp %194 : vector<2x32xf32>
    %cst_49 = arith.constant 1.000000e+00 : f32
    %196 = vector.broadcast %cst_49 : f32 to vector<2x32xf32>
    %197 = arith.addf %196, %195 : vector<2x32xf32>
    %198 = arith.divf %196, %197 : vector<2x32xf32>
    %199 = vector.extract_strided_slice %179 {offsets = [0, 64], sizes = [2, 32], strides = [1, 1]} : vector<2x96xf32> to vector<2x32xf32>
    %200 = vector.extract_strided_slice %182 {offsets = [0, 64], sizes = [2, 32], strides = [1, 1]} : vector<2x96xf32> to vector<2x32xf32>
    %201 = arith.mulf %190, %200 : vector<2x32xf32>
    %202 = arith.addf %199, %201 : vector<2x32xf32>
    %203 = math.tanh %202 : vector<2x32xf32>
    %cst_50 = arith.constant 1.000000e+00 : f32
    %204 = vector.broadcast %cst_50 : f32 to vector<2x32xf32>
    %205 = arith.subf %204, %198 : vector<2x32xf32>
    %206 = arith.mulf %205, %203 : vector<2x32xf32>
    %207 = arith.mulf %198, %174 : vector<2x32xf32>
    %208 = arith.addf %206, %207 : vector<2x32xf32>
    %c6 = arith.constant 6 : index
    %c0_51 = arith.constant 0 : index
    %c0_52 = arith.constant 0 : index
    %209 = vector.load %arg0[%c6, %c0_51, %c0_52] : memref<8x2x32xf32, #tpu.memory_space<vmem>>, vector<1x2x32xf32>
    %210 = vector.shape_cast %209 : vector<1x2x32xf32> to vector<2x32xf32>
    %cst_53 = arith.constant dense<0.000000e+00> : vector<2x96xf32>
    %211 = tpu.matmul %210, %0, %cst_53 {dimension_numbers = #tpu.dot_dimension_numbers<[1], [0], [0], [1], [0, 0, 1, 1], [], []>} : vector<2x32xf32>, vector<32x96xf32>, vector<2x96xf32> -> vector<2x96xf32>
    %212 = vector.broadcast %2 : vector<1x96xf32> to vector<2x96xf32>
    %213 = arith.addf %211, %212 : vector<2x96xf32>
    %cst_54 = arith.constant dense<0.000000e+00> : vector<2x96xf32>
    %214 = tpu.matmul %208, %1, %cst_54 {dimension_numbers = #tpu.dot_dimension_numbers<[1], [0], [0], [1], [0, 0, 1, 1], [], []>} : vector<2x32xf32>, vector<32x96xf32>, vector<2x96xf32> -> vector<2x96xf32>
    %215 = vector.broadcast %3 : vector<1x96xf32> to vector<2x96xf32>
    %216 = arith.addf %214, %215 : vector<2x96xf32>
    %217 = vector.extract_strided_slice %213 {offsets = [0, 0], sizes = [2, 32], strides = [1, 1]} : vector<2x96xf32> to vector<2x32xf32>
    %218 = vector.extract_strided_slice %216 {offsets = [0, 0], sizes = [2, 32], strides = [1, 1]} : vector<2x96xf32> to vector<2x32xf32>
    %219 = arith.addf %217, %218 : vector<2x32xf32>
    %220 = arith.negf %219 : vector<2x32xf32>
    %221 = math.exp %220 : vector<2x32xf32>
    %cst_55 = arith.constant 1.000000e+00 : f32
    %222 = vector.broadcast %cst_55 : f32 to vector<2x32xf32>
    %223 = arith.addf %222, %221 : vector<2x32xf32>
    %224 = arith.divf %222, %223 : vector<2x32xf32>
    %225 = vector.extract_strided_slice %213 {offsets = [0, 32], sizes = [2, 32], strides = [1, 1]} : vector<2x96xf32> to vector<2x32xf32>
    %226 = vector.extract_strided_slice %216 {offsets = [0, 32], sizes = [2, 32], strides = [1, 1]} : vector<2x96xf32> to vector<2x32xf32>
    %227 = arith.addf %225, %226 : vector<2x32xf32>
    %228 = arith.negf %227 : vector<2x32xf32>
    %229 = math.exp %228 : vector<2x32xf32>
    %cst_56 = arith.constant 1.000000e+00 : f32
    %230 = vector.broadcast %cst_56 : f32 to vector<2x32xf32>
    %231 = arith.addf %230, %229 : vector<2x32xf32>
    %232 = arith.divf %230, %231 : vector<2x32xf32>
    %233 = vector.extract_strided_slice %213 {offsets = [0, 64], sizes = [2, 32], strides = [1, 1]} : vector<2x96xf32> to vector<2x32xf32>
    %234 = vector.extract_strided_slice %216 {offsets = [0, 64], sizes = [2, 32], strides = [1, 1]} : vector<2x96xf32> to vector<2x32xf32>
    %235 = arith.mulf %224, %234 : vector<2x32xf32>
    %236 = arith.addf %233, %235 : vector<2x32xf32>
    %237 = math.tanh %236 : vector<2x32xf32>
    %cst_57 = arith.constant 1.000000e+00 : f32
    %238 = vector.broadcast %cst_57 : f32 to vector<2x32xf32>
    %239 = arith.subf %238, %232 : vector<2x32xf32>
    %240 = arith.mulf %239, %237 : vector<2x32xf32>
    %241 = arith.mulf %232, %208 : vector<2x32xf32>
    %242 = arith.addf %240, %241 : vector<2x32xf32>
    %c7 = arith.constant 7 : index
    %c0_58 = arith.constant 0 : index
    %c0_59 = arith.constant 0 : index
    %243 = vector.load %arg0[%c7, %c0_58, %c0_59] : memref<8x2x32xf32, #tpu.memory_space<vmem>>, vector<1x2x32xf32>
    %244 = vector.shape_cast %243 : vector<1x2x32xf32> to vector<2x32xf32>
    %cst_60 = arith.constant dense<0.000000e+00> : vector<2x96xf32>
    %245 = tpu.matmul %244, %0, %cst_60 {dimension_numbers = #tpu.dot_dimension_numbers<[1], [0], [0], [1], [0, 0, 1, 1], [], []>} : vector<2x32xf32>, vector<32x96xf32>, vector<2x96xf32> -> vector<2x96xf32>
    %246 = vector.broadcast %2 : vector<1x96xf32> to vector<2x96xf32>
    %247 = arith.addf %245, %246 : vector<2x96xf32>
    %cst_61 = arith.constant dense<0.000000e+00> : vector<2x96xf32>
    %248 = tpu.matmul %242, %1, %cst_61 {dimension_numbers = #tpu.dot_dimension_numbers<[1], [0], [0], [1], [0, 0, 1, 1], [], []>} : vector<2x32xf32>, vector<32x96xf32>, vector<2x96xf32> -> vector<2x96xf32>
    %249 = vector.broadcast %3 : vector<1x96xf32> to vector<2x96xf32>
    %250 = arith.addf %248, %249 : vector<2x96xf32>
    %251 = vector.extract_strided_slice %247 {offsets = [0, 0], sizes = [2, 32], strides = [1, 1]} : vector<2x96xf32> to vector<2x32xf32>
    %252 = vector.extract_strided_slice %250 {offsets = [0, 0], sizes = [2, 32], strides = [1, 1]} : vector<2x96xf32> to vector<2x32xf32>
    %253 = arith.addf %251, %252 : vector<2x32xf32>
    %254 = arith.negf %253 : vector<2x32xf32>
    %255 = math.exp %254 : vector<2x32xf32>
    %cst_62 = arith.constant 1.000000e+00 : f32
    %256 = vector.broadcast %cst_62 : f32 to vector<2x32xf32>
    %257 = arith.addf %256, %255 : vector<2x32xf32>
    %258 = arith.divf %256, %257 : vector<2x32xf32>
    %259 = vector.extract_strided_slice %247 {offsets = [0, 32], sizes = [2, 32], strides = [1, 1]} : vector<2x96xf32> to vector<2x32xf32>
    %260 = vector.extract_strided_slice %250 {offsets = [0, 32], sizes = [2, 32], strides = [1, 1]} : vector<2x96xf32> to vector<2x32xf32>
    %261 = arith.addf %259, %260 : vector<2x32xf32>
    %262 = arith.negf %261 : vector<2x32xf32>
    %263 = math.exp %262 : vector<2x32xf32>
    %cst_63 = arith.constant 1.000000e+00 : f32
    %264 = vector.broadcast %cst_63 : f32 to vector<2x32xf32>
    %265 = arith.addf %264, %263 : vector<2x32xf32>
    %266 = arith.divf %264, %265 : vector<2x32xf32>
    %267 = vector.extract_strided_slice %247 {offsets = [0, 64], sizes = [2, 32], strides = [1, 1]} : vector<2x96xf32> to vector<2x32xf32>
    %268 = vector.extract_strided_slice %250 {offsets = [0, 64], sizes = [2, 32], strides = [1, 1]} : vector<2x96xf32> to vector<2x32xf32>
    %269 = arith.mulf %258, %268 : vector<2x32xf32>
    %270 = arith.addf %267, %269 : vector<2x32xf32>
    %271 = math.tanh %270 : vector<2x32xf32>
    %cst_64 = arith.constant 1.000000e+00 : f32
    %272 = vector.broadcast %cst_64 : f32 to vector<2x32xf32>
    %273 = arith.subf %272, %266 : vector<2x32xf32>
    %274 = arith.mulf %273, %271 : vector<2x32xf32>
    %275 = arith.mulf %266, %242 : vector<2x32xf32>
    %276 = arith.addf %274, %275 : vector<2x32xf32>
    %c0_65 = arith.constant 0 : index
    %c0_66 = arith.constant 0 : index
    %277 = vector.load %arg6[%c0_65, %c0_66] : memref<2x32xf32, #tpu.memory_space<vmem>>, vector<2x32xf32>
    tpu.vector_store %arg6[%c0_65, %c0_66], %276 {strides = array<i32>} : memref<2x32xf32, #tpu.memory_space<vmem>>, vector<2x32xf32>,
    return
  }
}

module attributes {stable_mosaic.version = 11 : i64} {
  func.func @_decode_step_kernel(%arg0: memref<2x8x32xf32, #tpu.memory_space<vmem>>, %arg1: memref<2x8x32xf32, #tpu.memory_space<vmem>>, %arg2: memref<2x8xf32, #tpu.memory_space<vmem>>, %arg3: memref<2x8x3xf32, #tpu.memory_space<vmem>>, %arg4: memref<2x32xf32, #tpu.memory_space<vmem>>, %arg5: memref<2x32xf32, #tpu.memory_space<vmem>>, %arg6: memref<2x32xf32, #tpu.memory_space<vmem>>, %arg7: memref<2x32xf32, #tpu.memory_space<vmem>>, %arg8: memref<3x32xf32, #tpu.memory_space<vmem>>, %arg9: memref<32x96xf32, #tpu.memory_space<vmem>>, %arg10: memref<32x96xf32, #tpu.memory_space<vmem>>, %arg11: memref<1x96xf32, #tpu.memory_space<vmem>>, %arg12: memref<1x96xf32, #tpu.memory_space<vmem>>, %arg13: memref<32x64xf32, #tpu.memory_space<vmem>>, %arg14: memref<32x32xf32, #tpu.memory_space<vmem>>, %arg15: memref<32x32xf32, #tpu.memory_space<vmem>>, %arg16: memref<1x32xf32, #tpu.memory_space<vmem>>, %arg17: memref<1x32xf32, #tpu.memory_space<vmem>>, %arg18: memref<32x32xf32, #tpu.memory_space<vmem>>, %arg19: memref<32x32xf32, #tpu.memory_space<vmem>>, %arg20: memref<32x32xf32, #tpu.memory_space<vmem>>, %arg21: memref<1x32xf32, #tpu.memory_space<vmem>>, %arg22: memref<2x1xi32, #tpu.memory_space<vmem>>, %arg23: memref<2x1xf32, #tpu.memory_space<vmem>>, %arg24: memref<2x8xf32, #tpu.memory_space<vmem>>, %arg25: memref<2x8x3xf32, #tpu.memory_space<vmem>>, %arg26: memref<2x8x32xf32, #tpu.memory_space<vmem>>, %arg27: memref<2x32xf32, #tpu.memory_space<vmem>>, %arg28: memref<2x32xf32, #tpu.memory_space<vmem>>) attributes {dimension_semantics = [], scalar_prefetch = 0 : i64, scratch_operands = 0 : i64, tpu.core_type = #tpu.core_type<tc>} {
    %c0 = arith.constant 0 : index
    %c0_0 = arith.constant 0 : index
    %c0_1 = arith.constant 0 : index
    %0 = vector.load %arg0[%c0, %c0_0, %c0_1] : memref<2x8x32xf32, #tpu.memory_space<vmem>>, vector<2x8x32xf32>
    %c0_2 = arith.constant 0 : index
    %c0_3 = arith.constant 0 : index
    %1 = vector.load %arg2[%c0_2, %c0_3] : memref<2x8xf32, #tpu.memory_space<vmem>>, vector<2x8xf32>
    %c0_4 = arith.constant 0 : index
    %c0_5 = arith.constant 0 : index
    %2 = vector.load %arg4[%c0_4, %c0_5] : memref<2x32xf32, #tpu.memory_space<vmem>>, vector<2x32xf32>
    %c0_6 = arith.constant 0 : index
    %c0_7 = arith.constant 0 : index
    %3 = vector.load %arg5[%c0_6, %c0_7] : memref<2x32xf32, #tpu.memory_space<vmem>>, vector<2x32xf32>
    %c0_8 = arith.constant 0 : index
    %c0_9 = arith.constant 0 : index
    %4 = vector.load %arg9[%c0_8, %c0_9] : memref<32x96xf32, #tpu.memory_space<vmem>>, vector<32x96xf32>
    %c0_10 = arith.constant 0 : index
    %c0_11 = arith.constant 0 : index
    %5 = vector.load %arg10[%c0_10, %c0_11] : memref<32x96xf32, #tpu.memory_space<vmem>>, vector<32x96xf32>
    %c0_12 = arith.constant 0 : index
    %c0_13 = arith.constant 0 : index
    %6 = vector.load %arg11[%c0_12, %c0_13] : memref<1x96xf32, #tpu.memory_space<vmem>>, vector<1x96xf32>
    %c0_14 = arith.constant 0 : index
    %c0_15 = arith.constant 0 : index
    %7 = vector.load %arg12[%c0_14, %c0_15] : memref<1x96xf32, #tpu.memory_space<vmem>>, vector<1x96xf32>
    %cst = arith.constant dense<0.000000e+00> : vector<2x96xf32>
    %8 = tpu.matmul %2, %4, %cst {dimension_numbers = #tpu.dot_dimension_numbers<[1], [0], [0], [1], [0, 0, 1, 1], [], []>} : vector<2x32xf32>, vector<32x96xf32>, vector<2x96xf32> -> vector<2x96xf32>
    %9 = vector.broadcast %6 : vector<1x96xf32> to vector<2x96xf32>
    %10 = arith.addf %8, %9 : vector<2x96xf32>
    %cst_16 = arith.constant dense<0.000000e+00> : vector<2x96xf32>
    %11 = tpu.matmul %3, %5, %cst_16 {dimension_numbers = #tpu.dot_dimension_numbers<[1], [0], [0], [1], [0, 0, 1, 1], [], []>} : vector<2x32xf32>, vector<32x96xf32>, vector<2x96xf32> -> vector<2x96xf32>
    %12 = vector.broadcast %7 : vector<1x96xf32> to vector<2x96xf32>
    %13 = arith.addf %11, %12 : vector<2x96xf32>
    %14 = vector.extract_strided_slice %10 {offsets = [0, 0], sizes = [2, 32], strides = [1, 1]} : vector<2x96xf32> to vector<2x32xf32>
    %15 = vector.extract_strided_slice %13 {offsets = [0, 0], sizes = [2, 32], strides = [1, 1]} : vector<2x96xf32> to vector<2x32xf32>
    %16 = arith.addf %14, %15 : vector<2x32xf32>
    %17 = arith.negf %16 : vector<2x32xf32>
    %18 = math.exp %17 : vector<2x32xf32>
    %cst_17 = arith.constant 1.000000e+00 : f32
    %19 = vector.broadcast %cst_17 : f32 to vector<2x32xf32>
    %20 = arith.addf %19, %18 : vector<2x32xf32>
    %21 = arith.divf %19, %20 : vector<2x32xf32>
    %22 = vector.extract_strided_slice %10 {offsets = [0, 32], sizes = [2, 32], strides = [1, 1]} : vector<2x96xf32> to vector<2x32xf32>
    %23 = vector.extract_strided_slice %13 {offsets = [0, 32], sizes = [2, 32], strides = [1, 1]} : vector<2x96xf32> to vector<2x32xf32>
    %24 = arith.addf %22, %23 : vector<2x32xf32>
    %25 = arith.negf %24 : vector<2x32xf32>
    %26 = math.exp %25 : vector<2x32xf32>
    %cst_18 = arith.constant 1.000000e+00 : f32
    %27 = vector.broadcast %cst_18 : f32 to vector<2x32xf32>
    %28 = arith.addf %27, %26 : vector<2x32xf32>
    %29 = arith.divf %27, %28 : vector<2x32xf32>
    %30 = vector.extract_strided_slice %10 {offsets = [0, 64], sizes = [2, 32], strides = [1, 1]} : vector<2x96xf32> to vector<2x32xf32>
    %31 = vector.extract_strided_slice %13 {offsets = [0, 64], sizes = [2, 32], strides = [1, 1]} : vector<2x96xf32> to vector<2x32xf32>
    %32 = arith.mulf %21, %31 : vector<2x32xf32>
    %33 = arith.addf %30, %32 : vector<2x32xf32>
    %34 = math.tanh %33 : vector<2x32xf32>
    %cst_19 = arith.constant 1.000000e+00 : f32
    %35 = vector.broadcast %cst_19 : f32 to vector<2x32xf32>
    %36 = arith.subf %35, %29 : vector<2x32xf32>
    %37 = arith.mulf %36, %34 : vector<2x32xf32>
    %38 = arith.mulf %29, %3 : vector<2x32xf32>
    %39 = arith.addf %37, %38 : vector<2x32xf32>
    %c0_20 = arith.constant 0 : index
    %c0_21 = arith.constant 0 : index
    %40 = vector.load %arg28[%c0_20, %c0_21] : memref<2x32xf32, #tpu.memory_space<vmem>>, vector<2x32xf32>
    tpu.vector_store %arg28[%c0_20, %c0_21], %39 {strides = array<i32>} : memref<2x32xf32, #tpu.memory_space<vmem>>, vector<2x32xf32>,
    %41 = vector.shape_cast %0 : vector<2x8x32xf32> to vector<16x32xf32>
    %c0_22 = arith.constant 0 : index
    %c0_23 = arith.constant 0 : index
    %42 = vector.load %arg13[%c0_22, %c0_23] : memref<32x64xf32, #tpu.memory_space<vmem>>, vector<32x64xf32>
    %cst_24 = arith.constant dense<0.000000e+00> : vector<16x64xf32>
    %43 = tpu.matmul %41, %42, %cst_24 {dimension_numbers = #tpu.dot_dimension_numbers<[1], [0], [0], [1], [0, 0, 1, 1], [], []>} : vector<16x32xf32>, vector<32x64xf32>, vector<16x64xf32> -> vector<16x64xf32>
    %44 = vector.shape_cast %43 : vector<16x64xf32> to vector<2x8x64xf32>
    %c0_25 = arith.constant 0 : index
    %c0_26 = arith.constant 0 : index
    %45 = vector.load %arg14[%c0_25, %c0_26] : memref<32x32xf32, #tpu.memory_space<vmem>>, vector<32x32xf32>
    %cst_27 = arith.constant dense<0.000000e+00> : vector<2x32xf32>
    %46 = tpu.matmul %39, %45, %cst_27 {dimension_numbers = #tpu.dot_dimension_numbers<[1], [0], [0], [1], [0, 0, 1, 1], [], []>} : vector<2x32xf32>, vector<32x32xf32>, vector<2x32xf32> -> vector<2x32xf32>
    %c0_28 = arith.constant 0 : index
    %c0_29 = arith.constant 0 : index
    %47 = vector.load %arg7[%c0_28, %c0_29] : memref<2x32xf32, #tpu.memory_space<vmem>>, vector<2x32xf32>
    %c0_30 = arith.constant 0 : index
    %c0_31 = arith.constant 0 : index
    %48 = vector.load %arg15[%c0_30, %c0_31] : memref<32x32xf32, #tpu.memory_space<vmem>>, vector<32x32xf32>
    %cst_32 = arith.constant dense<0.000000e+00> : vector<2x32xf32>
    %49 = tpu.matmul %47, %48, %cst_32 {dimension_numbers = #tpu.dot_dimension_numbers<[1], [0], [0], [1], [0, 0, 1, 1], [], []>} : vector<2x32xf32>, vector<32x32xf32>, vector<2x32xf32> -> vector<2x32xf32>
    %50 = vector.extract_strided_slice %44 {offsets = [0, 0, 0], sizes = [2, 8, 32], strides = [1, 1, 1]} : vector<2x8x64xf32> to vector<2x8x32xf32>
    %51 = vector.shape_cast %46 : vector<2x32xf32> to vector<2x1x32xf32>
    %52 = vector.broadcast %51 : vector<2x1x32xf32> to vector<2x8x32xf32>
    %53 = arith.addf %50, %52 : vector<2x8x32xf32>
    %54 = math.tanh %53 : vector<2x8x32xf32>
    %55 = vector.extract_strided_slice %44 {offsets = [0, 0, 32], sizes = [2, 8, 32], strides = [1, 1, 1]} : vector<2x8x64xf32> to vector<2x8x32xf32>
    %56 = vector.shape_cast %49 : vector<2x32xf32> to vector<2x1x32xf32>
    %57 = vector.broadcast %56 : vector<2x1x32xf32> to vector<2x8x32xf32>
    %58 = arith.addf %55, %57 : vector<2x8x32xf32>
    %59 = math.tanh %58 : vector<2x8x32xf32>
    %c0_33 = arith.constant 0 : index
    %c0_34 = arith.constant 0 : index
    %60 = vector.load %arg16[%c0_33, %c0_34] : memref<1x32xf32, #tpu.memory_space<vmem>>, vector<1x32xf32>
    %61 = vector.shape_cast %60 : vector<1x32xf32> to vector<1x1x32xf32>
    %c0_35 = arith.constant 0 : index
    %c0_36 = arith.constant 0 : index
    %62 = vector.load %arg17[%c0_35, %c0_36] : memref<1x32xf32, #tpu.memory_space<vmem>>, vector<1x32xf32>
    %63 = vector.shape_cast %62 : vector<1x32xf32> to vector<1x1x32xf32>
    %64 = vector.broadcast %61 : vector<1x1x32xf32> to vector<2x8x32xf32>
    %65 = arith.mulf %54, %64 : vector<2x8x32xf32>
    %cst_37 = arith.constant dense<0.000000e+00> : vector<2x8xf32>
    %66 = vector.multi_reduction <add>, %65, %cst_37 [2] : vector<2x8x32xf32> to vector<2x8xf32>
    %67 = vector.broadcast %63 : vector<1x1x32xf32> to vector<2x8x32xf32>
    %68 = arith.mulf %59, %67 : vector<2x8x32xf32>
    %cst_38 = arith.constant dense<0.000000e+00> : vector<2x8xf32>
    %69 = vector.multi_reduction <add>, %68, %cst_38 [2] : vector<2x8x32xf32> to vector<2x8xf32>
    %cst_39 = arith.constant dense<0xFF800000> : vector<2xf32>
    %70 = vector.multi_reduction <maximumf>, %66, %cst_39 [1] : vector<2x8xf32> to vector<2xf32>
    %71 = vector.shape_cast %70 : vector<2xf32> to vector<2x1xf32>
    %72 = vector.broadcast %71 : vector<2x1xf32> to vector<2x8xf32>
    %73 = arith.subf %66, %72 : vector<2x8xf32>
    %74 = math.exp %73 : vector<2x8xf32>
    %cst_40 = arith.constant dense<0.000000e+00> : vector<2xf32>
    %75 = vector.multi_reduction <add>, %74, %cst_40 [1] : vector<2x8xf32> to vector<2xf32>
    %76 = vector.shape_cast %75 : vector<2xf32> to vector<2x1xf32>
    %77 = vector.broadcast %76 : vector<2x1xf32> to vector<2x8xf32>
    %78 = arith.divf %74, %77 : vector<2x8xf32>
    %cst_41 = arith.constant dense<0xFF800000> : vector<2xf32>
    %79 = vector.multi_reduction <maximumf>, %69, %cst_41 [1] : vector<2x8xf32> to vector<2xf32>
    %80 = vector.shape_cast %79 : vector<2xf32> to vector<2x1xf32>
    %81 = vector.broadcast %80 : vector<2x1xf32> to vector<2x8xf32>
    %82 = arith.subf %69, %81 : vector<2x8xf32>
    %83 = math.exp %82 : vector<2x8xf32>
    %cst_42 = arith.constant dense<0.000000e+00> : vector<2xf32>
    %84 = vector.multi_reduction <add>, %83, %cst_42 [1] : vector<2x8xf32> to vector<2xf32>
    %85 = vector.shape_cast %84 : vector<2xf32> to vector<2x1xf32>
    %86 = vector.broadcast %85 : vector<2x1xf32> to vector<2x8xf32>
    %87 = arith.divf %83, %86 : vector<2x8xf32>
    %88 = vector.shape_cast %78 : vector<2x8xf32> to vector<2x8x1xf32>
    %89 = vector.broadcast %88 : vector<2x8x1xf32> to vector<2x8x32xf32>
    %90 = arith.mulf %89, %0 : vector<2x8x32xf32>
    %cst_43 = arith.constant dense<0.000000e+00> : vector<2x32xf32>
    %91 = vector.multi_reduction <add>, %90, %cst_43 [1] : vector<2x8x32xf32> to vector<2x32xf32>
    %92 = vector.shape_cast %87 : vector<2x8xf32> to vector<2x8x1xf32>
    %93 = vector.broadcast %92 : vector<2x8x1xf32> to vector<2x8x32xf32>
    %94 = arith.mulf %93, %0 : vector<2x8x32xf32>
    %cst_44 = arith.constant dense<0.000000e+00> : vector<2x32xf32>
    %95 = vector.multi_reduction <add>, %94, %cst_44 [1] : vector<2x8x32xf32> to vector<2x32xf32>
    %c0_45 = arith.constant 0 : index
    %c0_46 = arith.constant 0 : index
    %96 = vector.load %arg18[%c0_45, %c0_46] : memref<32x32xf32, #tpu.memory_space<vmem>>, vector<32x32xf32>
    %cst_47 = arith.constant dense<0.000000e+00> : vector<16x32xf32>
    %97 = tpu.matmul %41, %96, %cst_47 {dimension_numbers = #tpu.dot_dimension_numbers<[1], [0], [0], [1], [0, 0, 1, 1], [], []>} : vector<16x32xf32>, vector<32x32xf32>, vector<16x32xf32> -> vector<16x32xf32>
    %98 = vector.shape_cast %97 : vector<16x32xf32> to vector<2x8x32xf32>
    %c0_48 = arith.constant 0 : index
    %c0_49 = arith.constant 0 : index
    %99 = vector.load %arg6[%c0_48, %c0_49] : memref<2x32xf32, #tpu.memory_space<vmem>>, vector<2x32xf32>
    %c0_50 = arith.constant 0 : index
    %c0_51 = arith.constant 0 : index
    %100 = vector.load %arg20[%c0_50, %c0_51] : memref<32x32xf32, #tpu.memory_space<vmem>>, vector<32x32xf32>
    %cst_52 = arith.constant dense<0.000000e+00> : vector<2x32xf32>
    %101 = tpu.matmul %99, %100, %cst_52 {dimension_numbers = #tpu.dot_dimension_numbers<[1], [0], [0], [1], [0, 0, 1, 1], [], []>} : vector<2x32xf32>, vector<32x32xf32>, vector<2x32xf32> -> vector<2x32xf32>
    %c0_53 = arith.constant 0 : index
    %c0_54 = arith.constant 0 : index
    %102 = vector.load %arg19[%c0_53, %c0_54] : memref<32x32xf32, #tpu.memory_space<vmem>>, vector<32x32xf32>
    %cst_55 = arith.constant dense<0.000000e+00> : vector<2x32xf32>
    %103 = tpu.matmul %91, %102, %cst_55 {dimension_numbers = #tpu.dot_dimension_numbers<[1], [0], [0], [1], [0, 0, 1, 1], [], []>} : vector<2x32xf32>, vector<32x32xf32>, vector<2x32xf32> -> vector<2x32xf32>
    %c0_56 = arith.constant 0 : index
    %c0_57 = arith.constant 0 : index
    %104 = vector.load %arg19[%c0_56, %c0_57] : memref<32x32xf32, #tpu.memory_space<vmem>>, vector<32x32xf32>
    %cst_58 = arith.constant dense<0.000000e+00> : vector<2x32xf32>
    %105 = tpu.matmul %95, %104, %cst_58 {dimension_numbers = #tpu.dot_dimension_numbers<[1], [0], [0], [1], [0, 0, 1, 1], [], []>} : vector<2x32xf32>, vector<32x32xf32>, vector<2x32xf32> -> vector<2x32xf32>
    %c0_59 = arith.constant 0 : index
    %c0_60 = arith.constant 0 : index
    %106 = vector.load %arg21[%c0_59, %c0_60] : memref<1x32xf32, #tpu.memory_space<vmem>>, vector<1x32xf32>
    %107 = vector.shape_cast %106 : vector<1x32xf32> to vector<1x1x32xf32>
    %108 = arith.addf %103, %101 : vector<2x32xf32>
    %109 = vector.shape_cast %108 : vector<2x32xf32> to vector<2x1x32xf32>
    %110 = vector.broadcast %109 : vector<2x1x32xf32> to vector<2x8x32xf32>
    %111 = arith.addf %98, %110 : vector<2x8x32xf32>
    %112 = math.tanh %111 : vector<2x8x32xf32>
    %113 = vector.broadcast %107 : vector<1x1x32xf32> to vector<2x8x32xf32>
    %114 = arith.mulf %112, %113 : vector<2x8x32xf32>
    %cst_61 = arith.constant dense<0.000000e+00> : vector<2x8xf32>
    %115 = vector.multi_reduction <add>, %114, %cst_61 [2] : vector<2x8x32xf32> to vector<2x8xf32>
    %116 = arith.addf %105, %101 : vector<2x32xf32>
    %117 = vector.shape_cast %116 : vector<2x32xf32> to vector<2x1x32xf32>
    %118 = vector.broadcast %117 : vector<2x1x32xf32> to vector<2x8x32xf32>
    %119 = arith.addf %98, %118 : vector<2x8x32xf32>
    %120 = math.tanh %119 : vector<2x8x32xf32>
    %121 = vector.broadcast %107 : vector<1x1x32xf32> to vector<2x8x32xf32>
    %122 = arith.mulf %120, %121 : vector<2x8x32xf32>
    %cst_62 = arith.constant dense<0.000000e+00> : vector<2x8xf32>
    %123 = vector.multi_reduction <add>, %122, %cst_62 [2] : vector<2x8x32xf32> to vector<2x8xf32>
    %cst_63 = arith.constant 5.000000e+00 : f32
    %124 = vector.broadcast %cst_63 : f32 to vector<2x8xf32>
    %125 = arith.mulf %124, %115 : vector<2x8xf32>
    %126 = arith.addf %125, %123 : vector<2x8xf32>
    %cst_64 = arith.constant 0.000000e+00 : f32
    %127 = vector.broadcast %cst_64 : f32 to vector<2x8xf32>
    %128 = arith.cmpf ole, %1, %127 : vector<2x8xf32>
    %cst_65 = arith.constant 0xFF800000 : f32
    %129 = vector.broadcast %cst_65 : f32 to vector<2x8xf32>
    %130 = arith.select %128, %129, %126 : vector<2x8xi1>, vector<2x8xf32>
    %131 = tpu.iota {dimensions = array<i32: 1>} : vector<2x8xi32>
    %132 = vector.extract_strided_slice %1 {offsets = [0, 7], sizes = [2, 1], strides = [1, 1]} : vector<2x8xf32> to vector<2x1xf32>
    %cst_66 = arith.constant 0.000000e+00 : f32
    %133 = vector.broadcast %cst_66 : f32 to vector<2x1xf32>
    %134 = arith.cmpf ole, %132, %133 : vector<2x1xf32>
    %c7_i32 = arith.constant 7 : i32
    %135 = vector.broadcast %c7_i32 : i32 to vector<2x8xi32>
    %136 = arith.cmpi eq, %131, %135 : vector<2x8xi32>
    %cst_67 = arith.constant 1.000000e+00 : f32
    %cst_68 = arith.constant 0.000000e+00 : f32
    %137 = vector.broadcast %cst_67 : f32 to vector<2x8xf32>
    %138 = vector.broadcast %cst_68 : f32 to vector<2x8xf32>
    %139 = arith.select %136, %137, %138 : vector<2x8xi1>, vector<2x8xf32>
    %140 = vector.shape_cast %134 : vector<2x1xi1> to vector<2x1xi1>
    %141 = vector.broadcast %140 : vector<2x1xi1> to vector<2x8xi1>
    %142 = arith.select %141, %139, %130 : vector<2x8xi1>, vector<2x8xf32>
    %cst_69 = arith.constant dense<0xFF800000> : vector<2xf32>
    %143 = vector.multi_reduction <maximumf>, %142, %cst_69 [1] : vector<2x8xf32> to vector<2xf32>
    %144 = vector.shape_cast %143 : vector<2xf32> to vector<2x1xf32>
    %145 = vector.broadcast %144 : vector<2x1xf32> to vector<2x8xf32>
    %146 = arith.cmpf oeq, %142, %145 : vector<2x8xf32>
    %c8_i32 = arith.constant 8 : i32
    %147 = vector.broadcast %c8_i32 : i32 to vector<2x8xi32>
    %148 = arith.select %146, %131, %147 : vector<2x8xi1>, vector<2x8xi32>
    %cst_70 = arith.constant dense<2147483647> : vector<2xi32>
    %149 = vector.multi_reduction <minsi>, %148, %cst_70 [1] : vector<2x8xi32> to vector<2xi32>
    %150 = vector.shape_cast %149 : vector<2xi32> to vector<2x1xi32>
    %c0_71 = arith.constant 0 : index
    %c0_72 = arith.constant 0 : index
    %151 = vector.load %arg22[%c0_71, %c0_72] : memref<2x1xi32, #tpu.memory_space<vmem>>, vector<2x1xi32>
    tpu.vector_store %arg22[%c0_71, %c0_72], %150 {strides = array<i32>} : memref<2x1xi32, #tpu.memory_space<vmem>>, vector<2x1xi32>,
    %152 = math.log %144 : vector<2x1xf32>
    %c0_73 = arith.constant 0 : index
    %c0_74 = arith.constant 0 : index
    %153 = vector.load %arg23[%c0_73, %c0_74] : memref<2x1xf32, #tpu.memory_space<vmem>>, vector<2x1xf32>
    tpu.vector_store %arg23[%c0_73, %c0_74], %152 {strides = array<i32>} : memref<2x1xf32, #tpu.memory_space<vmem>>, vector<2x1xf32>,
    %154 = vector.broadcast %150 : vector<2x1xi32> to vector<2x8xi32>
    %155 = arith.cmpi eq, %131, %154 : vector<2x8xi32>
    %156 = arith.extui %155 : vector<2x8xi1> to vector<2x8xi32>
    %157 = arith.sitofp %156 : vector<2x8xi32> to vector<2x8xf32>
    %cst_75 = arith.constant 0.000000e+00 : f32
    %158 = vector.broadcast %cst_75 : f32 to vector<2x8xf32>
    %159 = arith.cmpf ogt, %157, %158 : vector<2x8xf32>
    %cst_76 = arith.constant 0.000000e+00 : f32
    %160 = vector.broadcast %cst_76 : f32 to vector<2x8xf32>
    %161 = arith.select %159, %160, %1 : vector<2x8xi1>, vector<2x8xf32>
    %c0_77 = arith.constant 0 : index
    %c0_78 = arith.constant 0 : index
    %162 = vector.load %arg24[%c0_77, %c0_78] : memref<2x8xf32, #tpu.memory_space<vmem>>, vector<2x8xf32>
    tpu.vector_store %arg24[%c0_77, %c0_78], %161 {strides = array<i32>} : memref<2x8xf32, #tpu.memory_space<vmem>>, vector<2x8xf32>,
    %163 = vector.shape_cast %157 : vector<2x8xf32> to vector<2x8x1xf32>
    %164 = vector.broadcast %163 : vector<2x8x1xf32> to vector<2x8x32xf32>
    %165 = arith.mulf %164, %0 : vector<2x8x32xf32>
    %cst_79 = arith.constant dense<0.000000e+00> : vector<2x32xf32>
    %166 = vector.multi_reduction <add>, %165, %cst_79 [1] : vector<2x8x32xf32> to vector<2x32xf32>
    %167 = vector.extract_strided_slice %166 {offsets = [0, 0], sizes = [2, 1], strides = [1, 1]} : vector<2x32xf32> to vector<2x1xf32>
    %168 = vector.shape_cast %167 : vector<2x1xf32> to vector<2x1xf32>
    %169 = vector.broadcast %168 : vector<2x1xf32> to vector<2x32xf32>
    %c0_80 = arith.constant 0 : index
    %c0_81 = arith.constant 0 : index
    %170 = vector.load %arg27[%c0_80, %c0_81] : memref<2x32xf32, #tpu.memory_space<vmem>>, vector<2x32xf32>
    tpu.vector_store %arg27[%c0_80, %c0_81], %169 {strides = array<i32>} : memref<2x32xf32, #tpu.memory_space<vmem>>, vector<2x32xf32>,
    %171 = vector.shape_cast %161 : vector<2x8xf32> to vector<2x8x1xf32>
    %cst_82 = arith.constant 1.000000e+00 : f32
    %172 = vector.broadcast %cst_82 : f32 to vector<2x8x1xf32>
    %173 = arith.cmpf oeq, %171, %172 : vector<2x8x1xf32>
    %cst_83 = arith.constant 0.000000e+00 : f32
    %174 = vector.broadcast %cst_83 : f32 to vector<2x8x1xf32>
    %175 = arith.cmpf oeq, %171, %174 : vector<2x8x1xf32>
    %cst_84 = arith.constant -2.000000e+00 : f32
    %176 = vector.broadcast %cst_84 : f32 to vector<2x8x1xf32>
    %177 = arith.cmpf oeq, %171, %176 : vector<2x8x1xf32>
    %178 = arith.ori %175, %177 : vector<2x8x1xi1>
    %cst_85 = arith.constant 3.000000e+00 : f32
    %179 = vector.broadcast %cst_85 : f32 to vector<2x8x1xf32>
    %180 = arith.cmpf oeq, %171, %179 : vector<2x8x1xf32>
    %181 = arith.ori %178, %180 : vector<2x8x1xi1>
    %182 = arith.ori %173, %181 : vector<2x8x1xi1>
    %c0_86 = arith.constant 0 : index
    %c0_87 = arith.constant 0 : index
    %c0_88 = arith.constant 0 : index
    %183 = vector.load %arg3[%c0_86, %c0_87, %c0_88] : memref<2x8x3xf32, #tpu.memory_space<vmem>>, vector<2x8x3xf32>
    %184 = arith.extui %173 : vector<2x8x1xi1> to vector<2x8x1xi32>
    %185 = arith.sitofp %184 : vector<2x8x1xi32> to vector<2x8x1xf32>
    %186 = vector.extract_strided_slice %183 {offsets = [0, 0, 0], sizes = [2, 8, 1], strides = [1, 1, 1]} : vector<2x8x3xf32> to vector<2x8x1xf32>
    %187 = arith.select %182, %185, %186 : vector<2x8x1xi1>, vector<2x8x1xf32>
    %188 = arith.extui %180 : vector<2x8x1xi1> to vector<2x8x1xi32>
    %189 = arith.sitofp %188 : vector<2x8x1xi32> to vector<2x8x1xf32>
    %190 = vector.extract_strided_slice %183 {offsets = [0, 0, 1], sizes = [2, 8, 1], strides = [1, 1, 1]} : vector<2x8x3xf32> to vector<2x8x1xf32>
    %191 = arith.select %182, %189, %190 : vector<2x8x1xi1>, vector<2x8x1xf32>
    %192 = arith.extui %178 : vector<2x8x1xi1> to vector<2x8x1xi32>
    %193 = arith.sitofp %192 : vector<2x8x1xi32> to vector<2x8x1xf32>
    %194 = vector.extract_strided_slice %183 {offsets = [0, 0, 2], sizes = [2, 8, 1], strides = [1, 1, 1]} : vector<2x8x3xf32> to vector<2x8x1xf32>
    %195 = arith.select %182, %193, %194 : vector<2x8x1xi1>, vector<2x8x1xf32>
    %196 = tpu.concatenate %187, %191, %195 in 2 : vector<2x8x1xf32>, vector<2x8x1xf32>, vector<2x8x1xf32> -> vector<2x8x3xf32>
    %c0_89 = arith.constant 0 : index
    %c0_90 = arith.constant 0 : index
    %c0_91 = arith.constant 0 : index
    %197 = vector.load %arg25[%c0_89, %c0_90, %c0_91] : memref<2x8x3xf32, #tpu.memory_space<vmem>>, vector<2x8x3xf32>
    tpu.vector_store %arg25[%c0_89, %c0_90, %c0_91], %196 {strides = array<i32>} : memref<2x8x3xf32, #tpu.memory_space<vmem>>, vector<2x8x3xf32>,
    %c0_92 = arith.constant 0 : index
    %c0_93 = arith.constant 0 : index
    %198 = vector.load %arg8[%c0_92, %c0_93] : memref<3x32xf32, #tpu.memory_space<vmem>>, vector<1x32xf32>
    %199 = vector.shape_cast %198 : vector<1x32xf32> to vector<1x1x32xf32>
    %c1 = arith.constant 1 : index
    %c0_94 = arith.constant 0 : index
    %200 = vector.load %arg8[%c1, %c0_94] : memref<3x32xf32, #tpu.memory_space<vmem>>, vector<1x32xf32>
    %201 = vector.shape_cast %200 : vector<1x32xf32> to vector<1x1x32xf32>
    %c2 = arith.constant 2 : index
    %c0_95 = arith.constant 0 : index
    %202 = vector.load %arg8[%c2, %c0_95] : memref<3x32xf32, #tpu.memory_space<vmem>>, vector<1x32xf32>
    %203 = vector.shape_cast %202 : vector<1x32xf32> to vector<1x1x32xf32>
    %c0_96 = arith.constant 0 : index
    %c0_97 = arith.constant 0 : index
    %c0_98 = arith.constant 0 : index
    %204 = vector.load %arg1[%c0_96, %c0_97, %c0_98] : memref<2x8x32xf32, #tpu.memory_space<vmem>>, vector<2x8x32xf32>
    %205 = vector.broadcast %187 : vector<2x8x1xf32> to vector<2x8x32xf32>
    %206 = vector.broadcast %199 : vector<1x1x32xf32> to vector<2x8x32xf32>
    %207 = arith.mulf %205, %206 : vector<2x8x32xf32>
    %208 = arith.addf %204, %207 : vector<2x8x32xf32>
    %209 = vector.broadcast %191 : vector<2x8x1xf32> to vector<2x8x32xf32>
    %210 = vector.broadcast %201 : vector<1x1x32xf32> to vector<2x8x32xf32>
    %211 = arith.mulf %209, %210 : vector<2x8x32xf32>
    %212 = arith.addf %208, %211 : vector<2x8x32xf32>
    %213 = vector.broadcast %195 : vector<2x8x1xf32> to vector<2x8x32xf32>
    %214 = vector.broadcast %203 : vector<1x1x32xf32> to vector<2x8x32xf32>
    %215 = arith.mulf %213, %214 : vector<2x8x32xf32>
    %216 = arith.addf %212, %215 : vector<2x8x32xf32>
    %c0_99 = arith.constant 0 : index
    %c0_100 = arith.constant 0 : index
    %c0_101 = arith.constant 0 : index
    %217 = vector.load %arg26[%c0_99, %c0_100, %c0_101] : memref<2x8x32xf32, #tpu.memory_space<vmem>>, vector<2x8x32xf32>
    tpu.vector_store %arg26[%c0_99, %c0_100, %c0_101], %216 {strides = array<i32>} : memref<2x8x32xf32, #tpu.memory_space<vmem>>, vector<2x8x32xf32>,
    return
  }
}

</mosaic_0001>

<bundles_post_ra>
// kernel: _forward_impl.2
= control target key start
LH: loop header
LB: loop body
LE: loop exit
PB: predicated region body
PF: predicated region fallthrough
CT: control target
= control target key end

     0   :  { %12 = vsyncpa [#allocation3], 0  ;;  %s189_s21 = smov [#allocation2]   ;;  %s283_s0 = inlined_call_operand.vmem [shape: f32[2,8,2], index: 0, kind: input, shape index: {}]   ;;  %s284_s1 = inlined_call_operand.vmem [shape: f32[2,8,3], index: 1, kind: input, shape index: {}]   ;;  %s285_s2 = inlined_call_operand.vmem [shape: f32[2,32], index: 2, kind: input, shape index: {}]   ;;  %s286_s3 = inlined_call_operand.vmem [shape: f32[3,32], index: 3, kind: input, shape index: {}]   ;;  %s287_s4 = inlined_call_operand.hbm [shape: f32[1,32], index: 4, kind: input, shape index: {}]   ;;  %s288_s5 = inlined_call_operand.vmem [shape: f32[2,8,32], index: 5, kind: output, shape index: {0}]   ;;  %s289_s6 = inlined_call_operand.vmem [shape: f32[2,8,32], index: 6, kind: output, shape index: {1}]  }
   0x1   :  { %s27_s22 = sshll.u32 %s189_s21, 4  ;;  %s165_s25 = scalar_lea.hbm %s287_s4, 16  ;;  %s28_s22 = int_to_ptr.vmem [resolvable:$true] %s27_s22 }
   0x2   :  { %p166_p0 = scmp.ne.s32.totalorder %s287_s4, %s165_s25  ;;  %p169_p1 = scmp.lt.u32.totalorder %s165_s25, %s287_s4 }
   0x4   :  { %p171_p2 = pnand %p169_p1, %p166_p0 }
   0x6   :  { %174 = shalt.err (!%p171_p2)
}
   0x7   :  { %s175_s30 = scalar_lea.vmem %s28_s22, 16  ;;  %s179_s7 = scalar_lea.vmem %s28_s22, 32 }
   0x8   :  { %p176_p3 = scmp.ne.s32.totalorder %s28_s22, %s175_s30  ;;  %p180_p4 = scmp.lt.s32.totalorder %s28_s22, %s28_s22 }
   0x9   :  { %p181_p5 = scmp.lt.s32.totalorder %s179_s7, %s175_s30 }
   0xb   :  { %p182_p6 = por %p181_p5, %p180_p4 }
   0xd   :  { %p183_p7 = pnand %p182_p6, %p176_p3 }
   0xf   :  { %186 = shalt.err (!%p183_p7)
}
  0x10   :  { %30 = dma.hbm_to_vmem [thread:$0]  %s287_s4, 16, %s28_s22, [#allocation3]  }
  0x11   :  { %187 = dma.done.wait [#allocation3], 16  }
  0x12   :  { %188 = vsyncadd [#allocation3], 4294967280  ;;  %v190_v0 = vmov 1   ;;  %v191_v1 = vmov 0   ;;  %v41_v2 = vld [vmem:[%s283_s0] sm:$0xff]  ;;  %v42_v3 = vld [vmem:[%s283_s0 + $0x8] sm:$0xff] }
  0x13   :  { %159 = vset.pattern.permute.xlu1 %v190_v0  ;;  %158 = vset.pattern.permute.xlu0 %v191_v1  ;;  %v82_v4 = vld [vmem:[%s284_s1] sm:$0xff]  ;;  %v83_v5 = vld [vmem:[%s284_s1 + $0x8] sm:$0xff]  ;;  %v192_v6 = vmov 2   ;;  %vm79_vm0 = vcmask 261120  }
  0x14   :  { %64 = vperm.xlu1 %159, %v41_v2   ;;  %46 = vperm.xlu0 %158, %v41_v2   ;;  %v149_v7 = vld [vmem:[%s285_s2] ss:$0 sm:$0xff]  ;;  %v150_v8 = vld [vmem:[%s285_s2 + $0x1] ss:$0 sm:$0xff]  ;;  %v153_v32 = vld [vmem:[%s286_s3 + $0x2] ss:$0 sm:$0xff] }
  0x15   :  { %v148_v11 = vld [vmem:[#allocation2] ss:$0 sm:$0xff]  ;;  %v152_v25 = vld [vmem:[%s286_s3 + $0x1] ss:$0 sm:$0xff] }
  0x16   :  { %v151_v24 = vld [vmem:[%s286_s3] ss:$0 sm:$0xff] }
  0x18   :  { %68 = vperm.xlu1 %159, %v42_v3   ;;  %51 = vperm.xlu0 %158, %v42_v3  }
  0x1c   :  { %160 = vset.pattern.permute.xlu1 %v191_v1  ;;  %87 = vperm.xlu0 %158, %v82_v4  }
  0x1d   :  { %92 = vperm.xlu1 %160, %v83_v5  }
  0x20   :  { %161 = vset.pattern.permute.xlu0 %v190_v0 }
  0x21   :  { %162 = vset.pattern.permute.xlu1 %v190_v0  ;;  %105 = vperm.xlu0 %161, %v82_v4  }
  0x22   :  { %109 = vperm.xlu1 %162, %v83_v5  }
  0x25   :  { %164 = vset.pattern.permute.xlu0 %v192_v6 }
  0x26   :  { %163 = vset.pattern.permute.xlu1 %v192_v6  ;;  %126 = vperm.xlu0 %164, %v83_v5  }
  0x27   :  { %122 = vperm.xlu1 %163, %v82_v4  }
  0x93   :  { %v65_v9 = vpop.permute.xlu1 %64  ;;  %v47_v10 = vpop.permute.xlu0 %46 }
  0x94   :  { %v58_v12 = vmul.f32 %v149_v7, %v47_v10  ;;  %v75_v13 = vmul.f32 %v150_v8, %v65_v9 }
  0x96   :  { %v60_v14 = vadd.f32 %v148_v11, %v58_v12 }
  0x97   :  { %v69_v15 = vpop.permute.xlu1 %68  ;;  %v52_v16 = vpop.permute.xlu0 %51 }
  0x98   :  { %v59_v17 = vmul.f32 %v149_v7, %v52_v16  ;;  %v77_v18 = vadd.f32 %v75_v13, %v60_v14  ;;  %v76_v19 = vmul.f32 %v150_v8, %v69_v15 }
  0x9a   :  { %v61_v20 = vadd.f32 %v148_v11, %v59_v17  ;;  %80 = vst.msk [vmem:[%s288_s5] sm:$0xff] %vm79_vm0, %v77_v18 }
  0x9b   :  { %v88_v21 = vpop.permute.xlu0 %87 }
  0x9c   :  { %v93_v22 = vpop.permute.xlu1 %92  ;;  %v78_v23 = vadd.f32 %v76_v19, %v61_v20  ;;  %v99_v28 = vmul.f32 %v151_v24, %v88_v21 }
  0x9d   :  { %v100_v26 = vmul.f32 %v151_v24, %v93_v22 }
  0x9e   :  { %81 = vst.msk [vmem:[%s288_s5 + $0x8] sm:$0xff] %vm79_vm0, %v78_v23  ;;  %v101_v34 = vadd.f32 %v99_v28, %v77_v18 }
  0x9f   :  { %v102_v33 = vadd.f32 %v100_v26, %v78_v23 }
  0xa0   :  { %v106_v27 = vpop.permute.xlu0 %105 }
  0xa1   :  { %v110_v29 = vpop.permute.xlu1 %109  ;;  %v116_v31 = vmul.f32 %v152_v25, %v106_v27 }
  0xa2   :  { %v117_v30 = vmul.f32 %v152_v25, %v110_v29 }
  0xa3   :  { %v118_v39 = vadd.f32 %v116_v31, %v101_v34 }
  0xa4   :  { %v119_v36 = vadd.f32 %v117_v30, %v102_v33 }
  0xa5   :  { %v127_v35 = vpop.permute.xlu0 %126 }
  0xa6   :  { %v134_v37 = vmul.f32 %v153_v32, %v127_v35  ;;  %v123_v38 = vpop.permute.xlu1 %122 }
  0xa7   :  { %v133_v40 = vmul.f32 %v153_v32, %v123_v38 }
  0xa8   :  { %v136_v41 = vadd.f32 %v134_v37, %v119_v36 }
  0xa9   :  { %v135_v42 = vadd.f32 %v133_v40, %v118_v39 }
  0xaa   :  { %138 = vst.msk [vmem:[%s289_s6 + $0x8] sm:$0xff] %vm79_vm0, %v136_v41 }
  0xab   :  { %137 = vst.msk [vmem:[%s289_s6] sm:$0xff] %vm79_vm0, %v135_v42 }
  0xac   :  { %147 = vsyncpa [#allocation3], 1 }

// kernel: _forward_impl.3
= control target key start
LH: loop header
LB: loop body
LE: loop exit
PB: predicated region body
PF: predicated region fallthrough
CT: control target
= control target key end

     0   :  { %11 = vsyncpa [#allocation3], 0  ;;  %s2273_s0 = inlined_call_operand.vmem [shape: f32[8,2,32], index: 0, kind: input, shape index: {}]   ;;  %s2274_s1 = inlined_call_operand.vmem [shape: f32[2,32], index: 1, kind: input, shape index: {}]   ;;  %s2275_s2 = inlined_call_operand.vmem [shape: f32[32,96], index: 2, kind: input, shape index: {}]   ;;  %s2276_s3 = inlined_call_operand.vmem [shape: f32[32,96], index: 3, kind: input, shape index: {}]   ;;  %s2277_s4 = inlined_call_operand.hbm [shape: f32[1,96], index: 4, kind: input, shape index: {}]   ;;  %s2278_s5 = inlined_call_operand.hbm [shape: f32[1,96], index: 5, kind: input, shape index: {}]   ;;  %s2279_s6 = inlined_call_operand.vmem [shape: f32[2,32], index: 6, kind: output, shape index: {}]  }
   0x1   :  { %12 = vsyncpa [#allocation5], 0  ;;  %s1980_s21 = smov [#allocation2]   ;;  %s1981_s23 = smov [#allocation4]  }
   0x2   :  { %s27_s22 = sshll.u32 %s1980_s21, 4  ;;  %s37_s24 = sshll.u32 %s1981_s23, 4  ;;  %s28_s22 = int_to_ptr.vmem [resolvable:$true] %s27_s22  ;;  %s38_s24 = int_to_ptr.vmem [resolvable:$true] %s37_s24 }
   0x3   :  { %s1932_s27 = scalar_lea.hbm %s2277_s4, 16 }
   0x4   :  { %p1933_p0 = scmp.ne.s32.totalorder %s2277_s4, %s1932_s27  ;;  %p1936_p1 = scmp.lt.u32.totalorder %s1932_s27, %s2277_s4 }
   0x6   :  { %p1938_p2 = pnand %p1936_p1, %p1933_p0 }
   0x8   :  { %1941 = shalt.err (!%p1938_p2)
}
   0x9   :  { %s1942_s8 = scalar_lea.vmem %s28_s22, 16  ;;  %s1946_s9 = scalar_lea.vmem %s28_s22, 32 }
   0xa   :  { %p1943_p3 = scmp.ne.s32.totalorder %s28_s22, %s1942_s8  ;;  %p1947_p4 = scmp.lt.s32.totalorder %s28_s22, %s28_s22 }
   0xb   :  { %p1948_p5 = scmp.lt.s32.totalorder %s1946_s9, %s1942_s8 }
   0xd   :  { %p1949_p6 = por %p1948_p5, %p1947_p4 }
   0xf   :  { %p1950_p7 = pnand %p1949_p6, %p1943_p3 }
  0x11   :  { %1953 = shalt.err (!%p1950_p7)
}
  0x12   :  { %30 = dma.hbm_to_vmem [thread:$0]  %s2277_s4, 16, %s28_s22, [#allocation3]  }
  0x13   :  { %s1954_s14 = scalar_lea.hbm %s2278_s5, 16 }
  0x14   :  { %p1955_p8 = scmp.ne.s32.totalorder %s2278_s5, %s1954_s14  ;;  %p1958_p9 = scmp.lt.u32.totalorder %s1954_s14, %s2278_s5 }
  0x16   :  { %p1960_p10 = pnand %p1958_p9, %p1955_p8 }
  0x18   :  { %1963 = shalt.err (!%p1960_p10)
}
  0x19   :  { %s1964_s19 = scalar_lea.vmem %s38_s24, 16  ;;  %s1968_s20 = scalar_lea.vmem %s38_s24, 32 }
  0x1a   :  { %p1965_p11 = scmp.ne.s32.totalorder %s38_s24, %s1964_s19  ;;  %p1969_p12 = scmp.lt.s32.totalorder %s38_s24, %s38_s24 }
  0x1b   :  { %p1970_p13 = scmp.lt.s32.totalorder %s1968_s20, %s1964_s19 }
  0x1d   :  { %p1971_p0 = por %p1970_p13, %p1969_p12 }
  0x1f   :  { %p1972_p1 = pnand %p1971_p0, %p1965_p11 }
  0x21   :  { %1975 = shalt.err (!%p1972_p1)
}
  0x22   :  { %40 = dma.hbm_to_vmem [thread:$0]  %s2278_s5, 16, %s38_s24, [#allocation5]  }
  0x23   :  { %1976 = dma.done.wait [#allocation3], 16  }
  0x24   :  { %1977 = vsyncadd [#allocation3], 4294967280 }
  0x25   :  { %1978 = dma.done.wait [#allocation5], 16  }
  0x26   :  { %1979 = vsyncadd [#allocation5], 4294967280  ;;  %v1982_v0 = vmov 0.0|0.0   ;;  %vm1983_vm0 = vmmov 0   ;;  %v1984_v1 = vmov 0.0   ;;  %v47_v2 = vld [vmem:[%s2275_s2] sm:$0xff] }
  0x27   :  { %1780 = vmatprep.subr.bf16.mxu0 %v1982_v0  ;;  %1786 = vmatprep.subr.bf16.mxu1 %v1982_v0  ;;  %v48_v3 = vld [vmem:[%s2275_s2 + $0x8] sm:$0xff]  ;;  %v51_v4 = vld [vmem:[%s2276_s3] sm:$0xff]  ;;  %v49_v7 = vld [vmem:[%s2275_s2 + $0x10] sm:$0xff]  ;;  %vm65_vm1 = vcmask 261120   ;;  %s1986_s15 = smov 96   ;;  %s1987_s16 = smov 32  }
  0x28   :  { %1612 = vmatprep.mubr.msk.f32.mxu0 %vm1983_vm0, %v1984_v1  ;;  %1623 = vmatprep.mubr.msk.f32.mxu1 %vm1983_vm0, %v1984_v1  ;;  %v2062_v5 = vpack.c.bf16 %v48_v3, %v47_v2  ;;  %v52_v6 = vld [vmem:[%s2276_s3 + $0x8] sm:$0xff]  ;;  %v50_v8 = vld [vmem:[%s2275_s2 + $0x18] sm:$0xff]  ;;  %v53_v10 = vld [vmem:[%s2276_s3 + $0x10] sm:$0xff]  ;;  %vm1483_vm2 = vcmask 254976  }
  0x29   :  { %v2073_v9 = vpack.c.bf16 %v52_v6, %v51_v4  ;;  %v54_v11 = vld [vmem:[%s2276_s3 + $0x18] sm:$0xff]  ;;  %v2082_v12 = vpack.c.bf16 %v50_v8, %v49_v7  ;;  %v58_v14 = vld [vmem:[%s2273_s0] sm:$0x3]  ;;  %v2113_v16 = vld [vmem:[#allocation4] ss:$0 sm:$0xff] }
  0x2a   :  { %1782 = vmatpush3.bf16.msra.mxu0 %v2062_v5  ;;  %v2086_v13 = vpack.c.bf16 %v54_v11, %v53_v10  ;;  %v57_v15 = vld [vmem:[%s2274_s1] sm:$0x3]  ;;  %s1985_s1 = smov 64   ;;  %v1496_v34 = vld [vmem:[%s2273_s0 + $0x2] sm:$0x3] }
  0x2b   :  { %1788 = vmatpush3.bf16.msra.mxu1 %v2073_v9  ;;  %1783 = vmatprep.subr.bf16.mxu0 %v1982_v0  ;;  %v2117_v22 = vld [vmem:[#allocation2] ss:$0 sm:$0xff]  ;;  %v1500_v58 = vld [vmem:[%s2273_s0 + $0x4] sm:$0x3] }
  0x2c   :  { %1789 = vmatprep.subr.bf16.mxu1 %v1982_v0 }
  0x2e   :  { %1785 = vmatpush3.bf16.msra.mxu0 %v2082_v12 }
  0x2f   :  { %1791 = vmatpush3.bf16.msra.mxu1 %v2086_v13  ;;  %1792 = vmatprep.subr.bf16.mxu0 %v1982_v0 }
  0x30   :  { %1798 = vmatprep.subr.bf16.mxu1 %v1982_v0 }
  0x31   :  { %1613 = vmatmul.mubr.msk.f32.vlgmr.msra.gmra.mrb[0].mxu0 %vm65_vm1, %v58_v14 }
  0x32   :  { %1624 = vmatmul.mubr.msk.f32.vlgmr.msra.gmra.mrb[0].mxu1 %vm65_vm1, %v57_v15  ;;  %1794 = vmatpush3.bf16.msra.mxu0 %v2062_v5 }
  0x33   :  { %1800 = vmatpush3.bf16.msra.mxu1 %v2073_v9  ;;  %1795 = vmatprep.subr.bf16.mxu0 %v1982_v0 }
  0x34   :  { %1801 = vmatprep.subr.bf16.mxu1 %v1982_v0  ;;  %1634 = vmatprep.mubr.msk.f32.mxu0 %vm1983_vm0, %v1984_v1 }
  0x35   :  { %1645 = vmatprep.mubr.msk.f32.mxu1 %vm1983_vm0, %v1984_v1 }
  0x36   :  { %1797 = vmatpush3.bf16.msra.mxu0 %v2082_v12 }
  0x37   :  { %1803 = vmatpush3.bf16.msra.mxu1 %v2086_v13  ;;  %1804 = vmatprep.subr.bf16.mxu0 %v1982_v0 }
  0x38   :  { %1810 = vmatprep.subr.bf16.mxu1 %v1982_v0 }
  0x39   :  { %1635 = vmatmul.mubr.msk.f32.vlgmr.msra.gmra.mrb[2].mxu0 %vm65_vm1, %v1496_v34 }
  0x3a   :  { %1806 = vmatpush3.bf16.msra.mxu0 %v2062_v5  ;;  %1656 = vmatprep.mubr.msk.f32.mxu0 %vm1983_vm0, %v1984_v1 }
  0x3b   :  { %1807 = vmatprep.subr.bf16.mxu0 %v1982_v0 }
  0x3e   :  { %1809 = vmatpush3.bf16.msra.mxu0 %v2082_v12 }
  0x3f   :  { %1816 = vmatprep.subr.bf16.mxu0 %v1982_v0 }
  0x41   :  { %1657 = vmatmul.mubr.msk.f32.vlgmr.msra.gmra.mrb[4].mxu0 %vm65_vm1, %v1500_v58 }
  0x42   :  { %1818 = vmatpush3.bf16.msra.mxu0 %v2062_v5  ;;  %1678 = vmatprep.mubr.msk.f32.mxu0 %vm1983_vm0, %v1984_v1 }
  0x43   :  { %1819 = vmatprep.subr.bf16.mxu0 %v1982_v0 }
  0x46   :  { %1821 = vmatpush3.bf16.msra.mxu0 %v2082_v12 }
  0x47   :  { %1828 = vmatprep.subr.bf16.mxu0 %v1982_v0 }
 0x104   :  { %v135_v17 = vpop.f32.mrb[0].mxu0 }
 0x105   :  { %v214_v18 = vpop.f32.mrb[0].mxu1  ;;  %v1614_v19 = vpop.f32.mrb[1].mxu0  ;;  %v136_v23 = vadd.f32 %v2117_v22, %v135_v17 }
 0x106   :  { %v215_v20 = vadd.f32 %v2113_v16, %v214_v18  ;;  %v1625_v21 = vpop.f32.mrb[1].mxu1 }
 0x108   :  { %226 = vrot.lane.b32.xlu0 %v215_v20, %s1985_s1  ;;  %v218_v24 = vadd.f32 %v215_v20, %v136_v23 }
 0x10a   :  { %v1495_v25 = vmul.f32 -1.442695, %v218_v24 }
 0x10c   :  { %1884 = vpow2.f32 %v1495_v25  ;;  %v318_v42 = vpop.f32.mrb[2].mxu0  ;;  %v1504_v25 = vld [vmem:[%s2273_s0 + $0x6] sm:$0x3] }
 0x10d   :  { %v1636_v43 = vpop.f32.mrb[3].mxu0  ;;  %v319_v47 = vadd.f32 %v2117_v22, %v318_v42  ;;  %1679 = vmatmul.mubr.msk.f32.vlgmr.msra.gmra.mrb[6].mxu0 %vm65_vm1, %v1504_v25 }
 0x10e   :  { %1830 = vmatpush3.bf16.msra.mxu0 %v2062_v5  ;;  %1700 = vmatprep.mubr.msk.f32.mxu0 %vm1983_vm0, %v1984_v1 }
 0x10f   :  { %1831 = vmatprep.subr.bf16.mxu0 %v1982_v0 }
 0x112   :  { %1833 = vmatpush3.bf16.msra.mxu0 %v2082_v12 }
 0x113   :  { %1840 = vmatprep.subr.bf16.mxu0 %v1982_v0 }
 0x114   :  { %v494_v3 = vpop.f32.mrb[4].mxu0 }
 0x115   :  { %v1658_v4 = vpop.f32.mrb[5].mxu0  ;;  %v495_v10 = vadd.f32 %v2117_v22, %v494_v3 }
 0x116   :  { %v1885_v26 = vpop.eup %1884 }
 0x117   :  { %v222_v27 = vadd.f32 1.0, %v1885_v26 }
 0x119   :  { %1886 = vrcp.f32 %v222_v27 }
 0x123   :  { %v1887_v28 = vpop.eup %1886 }
 0x124   :  { %v236_v36 = vsub.f32 1.0, %v1887_v28 }
 0x17a   :  { %v227_v29 = vpop.permute.xlu0 %226 }
 0x17b   :  { %v229_v30 = vmul.f32 %v1887_v28, %v227_v29 }
 0x17d   :  { %231 = vrot.lane.b32.xlu0 %v229_v30, %s1985_s1 }
 0x1ef   :  { %v232_v31 = vpop.permute.xlu0 %231 }
 0x1f0   :  { %v234_v32 = vadd.f32 %v232_v31, %v136_v23 }
 0x1f2   :  { %1888 = vtanh.f32 %v234_v32  ;;  %v670_v32 = vpop.f32.mrb[6].mxu0 }
 0x1fc   :  { %v1889_v33 = vpop.eup %1888 }
 0x1fd   :  { %238 = vrot.lane.b32.xlu1 %v1889_v33, %s1986_s15  ;;  %v1680_v33 = vpop.f32.mrb[7].mxu0 }
 0x201   :  { %242 = vrot.lane.b32.xlu1 %v57_v15, %s1987_s16 }
 0x26f   :  { %v239_v35 = vpop.permute.xlu1 %238 }
 0x270   :  { %v241_v38 = vmul.f32 %v239_v35, %v236_v36 }
 0x273   :  { %v243_v37 = vpop.permute.xlu1 %242 }
 0x274   :  { %v245_v39 = vmul.f32 %v1887_v28, %v243_v37  ;;  %v671_v37 = vadd.f32 %v2117_v22, %v670_v32 }
 0x276   :  { %v246_v40 = vadd.f32 %v245_v39, %v241_v38 }
 0x278   :  { %323 = vrot.lane.b32.xlu0 %v246_v40, %s1986_s15 }
 0x2ea   :  { %v324_v41 = vpop.permute.xlu0 %323 }
 0x2eb   :  { %1646 = vmatmul.mubr.msk.f32.vlgmr.msra.gmra.mrb[2].mxu1 %vm65_vm1, %v324_v41 }
 0x2ec   :  { %1812 = vmatpush3.bf16.msra.mxu1 %v2073_v9  ;;  %1667 = vmatprep.mubr.msk.f32.mxu1 %vm1983_vm0, %v1984_v1 }
 0x2ed   :  { %1813 = vmatprep.subr.bf16.mxu1 %v1982_v0 }
 0x2f0   :  { %1815 = vmatpush3.bf16.msra.mxu1 %v2086_v13 }
 0x2f1   :  { %1822 = vmatprep.subr.bf16.mxu1 %v1982_v0 }
 0x3be   :  { %v393_v44 = vpop.f32.mrb[2].mxu1 }
 0x3bf   :  { %v394_v45 = vadd.f32 %v2113_v16, %v393_v44  ;;  %v1647_v46 = vpop.f32.mrb[3].mxu1 }
 0x3c1   :  { %405 = vrot.lane.b32.xlu1 %v394_v45, %s1985_s1  ;;  %v397_v48 = vadd.f32 %v394_v45, %v319_v47 }
 0x3c3   :  { %v1499_v49 = vmul.f32 -1.442695, %v397_v48  ;;  %v1508_v48 = vld [vmem:[%s2273_s0 + $0x8] sm:$0x3] }
 0x3c4   :  { %1701 = vmatmul.mubr.msk.f32.vlgmr.msra.gmra.mrb[8].mxu0 %vm65_vm1, %v1508_v48 }
 0x3c5   :  { %1890 = vpow2.f32 %v1499_v49  ;;  %1842 = vmatpush3.bf16.msra.mxu0 %v2062_v5  ;;  %1722 = vmatprep.mubr.msk.f32.mxu0 %vm1983_vm0, %v1984_v1 }
 0x3c6   :  { %1843 = vmatprep.subr.bf16.mxu0 %v1982_v0 }
 0x3c9   :  { %1845 = vmatpush3.bf16.msra.mxu0 %v2082_v12 }
 0x3ca   :  { %1852 = vmatprep.subr.bf16.mxu0 %v1982_v0 }
 0x3cf   :  { %v1891_v50 = vpop.eup %1890 }
 0x3d0   :  { %v401_v51 = vadd.f32 1.0, %v1891_v50 }
 0x3d2   :  { %1892 = vrcp.f32 %v401_v51 }
 0x3dc   :  { %v1893_v52 = vpop.eup %1892 }
 0x3dd   :  { %v415_v59 = vsub.f32 1.0, %v1893_v52  ;;  %v421_v61 = vmul.f32 %v1893_v52, %v246_v40 }
 0x433   :  { %v406_v53 = vpop.permute.xlu1 %405 }
 0x434   :  { %v408_v54 = vmul.f32 %v1893_v52, %v406_v53 }
 0x436   :  { %410 = vrot.lane.b32.xlu0 %v408_v54, %s1985_s1 }
 0x4a8   :  { %v411_v55 = vpop.permute.xlu0 %410 }
 0x4a9   :  { %v413_v56 = vadd.f32 %v411_v55, %v319_v47  ;;  %v846_v55 = vpop.f32.mrb[8].mxu0 }
 0x4ab   :  { %1894 = vtanh.f32 %v413_v56  ;;  %v1702_v56 = vpop.f32.mrb[9].mxu0 }
 0x4b5   :  { %v1895_v57 = vpop.eup %1894 }
 0x4b6   :  { %417 = vrot.lane.b32.xlu1 %v1895_v57, %s1986_s15 }
 0x528   :  { %v418_v60 = vpop.permute.xlu1 %417 }
 0x529   :  { %v420_v62 = vmul.f32 %v418_v60, %v415_v59  ;;  %v847_v60 = vadd.f32 %v2117_v22, %v846_v55  ;;  %v1520_v55 = vld [vmem:[%s2273_s0 + $0xe] sm:$0x3] }
 0x52b   :  { %v422_v63 = vadd.f32 %v421_v61, %v420_v62 }
 0x52d   :  { %499 = vrot.lane.b32.xlu0 %v422_v63, %s1986_s15 }
 0x59f   :  { %v500_v2 = vpop.permute.xlu0 %499 }
 0x5a0   :  { %1668 = vmatmul.mubr.msk.f32.vlgmr.msra.gmra.mrb[4].mxu1 %vm65_vm1, %v500_v2 }
 0x5a1   :  { %1824 = vmatpush3.bf16.msra.mxu1 %v2073_v9  ;;  %1689 = vmatprep.mubr.msk.f32.mxu1 %vm1983_vm0, %v1984_v1 }
 0x5a2   :  { %1825 = vmatprep.subr.bf16.mxu1 %v1982_v0 }
 0x5a5   :  { %1827 = vmatpush3.bf16.msra.mxu1 %v2086_v13 }
 0x5a6   :  { %1834 = vmatprep.subr.bf16.mxu1 %v1982_v0 }
 0x673   :  { %v569_v6 = vpop.f32.mrb[4].mxu1 }
 0x674   :  { %v570_v7 = vadd.f32 %v2113_v16, %v569_v6  ;;  %v1669_v8 = vpop.f32.mrb[5].mxu1 }
 0x676   :  { %581 = vrot.lane.b32.xlu1 %v570_v7, %s1985_s1  ;;  %v573_v11 = vadd.f32 %v570_v7, %v495_v10 }
 0x678   :  { %v1503_v14 = vmul.f32 -1.442695, %v573_v11  ;;  %v1512_v11 = vld [vmem:[%s2273_s0 + $0xa] sm:$0x3] }
 0x679   :  { %1723 = vmatmul.mubr.msk.f32.vlgmr.msra.gmra.mrb[10].mxu0 %vm65_vm1, %v1512_v11 }
 0x67a   :  { %1896 = vpow2.f32 %v1503_v14  ;;  %1854 = vmatpush3.bf16.msra.mxu0 %v2062_v5  ;;  %1744 = vmatprep.mubr.msk.f32.mxu0 %vm1983_vm0, %v1984_v1 }
 0x67b   :  { %1855 = vmatprep.subr.bf16.mxu0 %v1982_v0 }
 0x67e   :  { %1857 = vmatpush3.bf16.msra.mxu0 %v2082_v12 }
 0x67f   :  { %1864 = vmatprep.subr.bf16.mxu0 %v1982_v0 }
 0x684   :  { %v1897_v15 = vpop.eup %1896 }
 0x685   :  { %v577_v17 = vadd.f32 1.0, %v1897_v15 }
 0x687   :  { %1898 = vrcp.f32 %v577_v17 }
 0x691   :  { %v1899_v18 = vpop.eup %1898 }
 0x692   :  { %v591_v26 = vsub.f32 1.0, %v1899_v18  ;;  %v597_v28 = vmul.f32 %v1899_v18, %v422_v63 }
 0x6e8   :  { %v582_v19 = vpop.permute.xlu1 %581 }
 0x6e9   :  { %v584_v20 = vmul.f32 %v1899_v18, %v582_v19 }
 0x6eb   :  { %586 = vrot.lane.b32.xlu0 %v584_v20, %s1985_s1 }
 0x75d   :  { %v587_v21 = vpop.permute.xlu0 %586 }
 0x75e   :  { %v589_v23 = vadd.f32 %v587_v21, %v495_v10  ;;  %v1022_v21 = vpop.f32.mrb[10].mxu0 }
 0x760   :  { %1900 = vtanh.f32 %v589_v23  ;;  %v1724_v23 = vpop.f32.mrb[11].mxu0 }
 0x76a   :  { %v1901_v24 = vpop.eup %1900 }
 0x76b   :  { %593 = vrot.lane.b32.xlu1 %v1901_v24, %s1986_s15 }
 0x7dd   :  { %v594_v27 = vpop.permute.xlu1 %593 }
 0x7de   :  { %v596_v29 = vmul.f32 %v594_v27, %v591_v26  ;;  %v1023_v27 = vadd.f32 %v2117_v22, %v1022_v21 }
 0x7e0   :  { %v598_v30 = vadd.f32 %v597_v28, %v596_v29 }
 0x7e2   :  { %675 = vrot.lane.b32.xlu0 %v598_v30, %s1986_s15 }
 0x854   :  { %v676_v31 = vpop.permute.xlu0 %675 }
 0x855   :  { %1690 = vmatmul.mubr.msk.f32.vlgmr.msra.gmra.mrb[6].mxu1 %vm65_vm1, %v676_v31 }
 0x856   :  { %1836 = vmatpush3.bf16.msra.mxu1 %v2073_v9  ;;  %1711 = vmatprep.mubr.msk.f32.mxu1 %vm1983_vm0, %v1984_v1 }
 0x857   :  { %1837 = vmatprep.subr.bf16.mxu1 %v1982_v0 }
 0x85a   :  { %1839 = vmatpush3.bf16.msra.mxu1 %v2086_v13 }
 0x85b   :  { %1846 = vmatprep.subr.bf16.mxu1 %v1982_v0 }
 0x928   :  { %v745_v34 = vpop.f32.mrb[6].mxu1 }
 0x929   :  { %v746_v35 = vadd.f32 %v2113_v16, %v745_v34  ;;  %v1691_v36 = vpop.f32.mrb[7].mxu1 }
 0x92b   :  { %757 = vrot.lane.b32.xlu1 %v746_v35, %s1985_s1  ;;  %v749_v38 = vadd.f32 %v746_v35, %v671_v37 }
 0x92d   :  { %v1507_v39 = vmul.f32 -1.442695, %v749_v38  ;;  %v1516_v38 = vld [vmem:[%s2273_s0 + $0xc] sm:$0x3] }
 0x92e   :  { %1745 = vmatmul.mubr.msk.f32.vlgmr.msra.gmra.mrb[12].mxu0 %vm65_vm1, %v1516_v38 }
 0x92f   :  { %1902 = vpow2.f32 %v1507_v39  ;;  %1866 = vmatpush3.bf16.msra.mxu0 %v2062_v5  ;;  %1766 = vmatprep.mubr.msk.f32.mxu0 %vm1983_vm0, %v1984_v1 }
 0x930   :  { %1867 = vmatprep.subr.bf16.mxu0 %v1982_v0 }
 0x933   :  { %1869 = vmatpush3.bf16.msra.mxu0 %v2082_v12 }
 0x936   :  { %1767 = vmatmul.mubr.msk.f32.vlgmr.msra.gmra.mrb[14].mxu0 %vm65_vm1, %v1520_v55 }
 0x939   :  { %v1903_v40 = vpop.eup %1902 }
 0x93a   :  { %v753_v41 = vadd.f32 1.0, %v1903_v40 }
 0x93c   :  { %1904 = vrcp.f32 %v753_v41 }
 0x946   :  { %v1905_v42 = vpop.eup %1904 }
 0x947   :  { %v767_v49 = vsub.f32 1.0, %v1905_v42  ;;  %v773_v51 = vmul.f32 %v1905_v42, %v598_v30 }
 0x99d   :  { %v758_v43 = vpop.permute.xlu1 %757 }
 0x99e   :  { %v760_v44 = vmul.f32 %v1905_v42, %v758_v43 }
 0x9a0   :  { %762 = vrot.lane.b32.xlu0 %v760_v44, %s1985_s1 }
 0xa01   :  { %v1198_v5 = vpop.f32.mrb[12].mxu0 }
 0xa02   :  { %v1746_v12 = vpop.f32.mrb[13].mxu0  ;;  %v1199_v48 = vadd.f32 %v2117_v22, %v1198_v5 }
 0xa12   :  { %v763_v45 = vpop.permute.xlu0 %762 }
 0xa13   :  { %v765_v46 = vadd.f32 %v763_v45, %v671_v37 }
 0xa15   :  { %1906 = vtanh.f32 %v765_v46 }
 0xa1f   :  { %v1907_v47 = vpop.eup %1906 }
 0xa20   :  { %769 = vrot.lane.b32.xlu1 %v1907_v47, %s1986_s15 }
 0xa92   :  { %v770_v50 = vpop.permute.xlu1 %769 }
 0xa93   :  { %v772_v52 = vmul.f32 %v770_v50, %v767_v49 }
 0xa95   :  { %v774_v53 = vadd.f32 %v773_v51, %v772_v52 }
 0xa97   :  { %851 = vrot.lane.b32.xlu0 %v774_v53, %s1986_s15 }
 0xb09   :  { %v852_v54 = vpop.permute.xlu0 %851 }
 0xb0a   :  { %1712 = vmatmul.mubr.msk.f32.vlgmr.msra.gmra.mrb[8].mxu1 %vm65_vm1, %v852_v54 }
 0xb0b   :  { %1848 = vmatpush3.bf16.msra.mxu1 %v2073_v9  ;;  %1733 = vmatprep.mubr.msk.f32.mxu1 %vm1983_vm0, %v1984_v1 }
 0xb0c   :  { %1849 = vmatprep.subr.bf16.mxu1 %v1982_v0 }
 0xb0f   :  { %1851 = vmatpush3.bf16.msra.mxu1 %v2086_v13 }
 0xb10   :  { %1858 = vmatprep.subr.bf16.mxu1 %v1982_v0 }
 0xbdd   :  { %v921_v57 = vpop.f32.mrb[8].mxu1 }
 0xbde   :  { %v922_v58 = vadd.f32 %v2113_v16, %v921_v57  ;;  %v1713_v59 = vpop.f32.mrb[9].mxu1 }
 0xbe0   :  { %933 = vrot.lane.b32.xlu1 %v922_v58, %s1985_s1  ;;  %v925_v61 = vadd.f32 %v922_v58, %v847_v60 }
 0xbe2   :  { %v1511_v62 = vmul.f32 -1.442695, %v925_v61 }
 0xbe4   :  { %1908 = vpow2.f32 %v1511_v62  ;;  %v1374_v62 = vpop.f32.mrb[14].mxu0 }
 0xbee   :  { %v1909_v63 = vpop.eup %1908 }
 0xbef   :  { %v929_v2 = vadd.f32 1.0, %v1909_v63  ;;  %v1768_v63 = vpop.f32.mrb[15].mxu0 }
 0xbf1   :  { %1910 = vrcp.f32 %v929_v2 }
 0xbfb   :  { %v1911_v3 = vpop.eup %1910 }
 0xbfc   :  { %v943_v14 = vsub.f32 1.0, %v1911_v3  ;;  %v949_v17 = vmul.f32 %v1911_v3, %v774_v53 }
 0xc52   :  { %v934_v4 = vpop.permute.xlu1 %933 }
 0xc53   :  { %v936_v6 = vmul.f32 %v1911_v3, %v934_v4 }
 0xc55   :  { %938 = vrot.lane.b32.xlu0 %v936_v6, %s1985_s1  ;;  %v1375_v6 = vadd.f32 %v2117_v22, %v1374_v62 }
 0xcc7   :  { %v939_v7 = vpop.permute.xlu0 %938 }
 0xcc8   :  { %v941_v8 = vadd.f32 %v939_v7, %v847_v60 }
 0xcca   :  { %1912 = vtanh.f32 %v941_v8 }
 0xcd4   :  { %v1913_v10 = vpop.eup %1912 }
 0xcd5   :  { %945 = vrot.lane.b32.xlu1 %v1913_v10, %s1986_s15 }
 0xd47   :  { %v946_v15 = vpop.permute.xlu1 %945 }
 0xd48   :  { %v948_v18 = vmul.f32 %v946_v15, %v943_v14 }
 0xd4a   :  { %v950_v19 = vadd.f32 %v949_v17, %v948_v18 }
 0xd4c   :  { %1027 = vrot.lane.b32.xlu0 %v950_v19, %s1986_s15 }
 0xdbe   :  { %v1028_v20 = vpop.permute.xlu0 %1027 }
 0xdbf   :  { %1734 = vmatmul.mubr.msk.f32.vlgmr.msra.gmra.mrb[10].mxu1 %vm65_vm1, %v1028_v20 }
 0xdc0   :  { %1860 = vmatpush3.bf16.msra.mxu1 %v2073_v9  ;;  %1755 = vmatprep.mubr.msk.f32.mxu1 %vm1983_vm0, %v1984_v1 }
 0xdc1   :  { %1861 = vmatprep.subr.bf16.mxu1 %v1982_v0 }
 0xdc4   :  { %1863 = vmatpush3.bf16.msra.mxu1 %v2086_v13 }
 0xdc5   :  { %1870 = vmatprep.subr.bf16.mxu1 %v1982_v0 }
 0xe92   :  { %v1097_v24 = vpop.f32.mrb[10].mxu1 }
 0xe93   :  { %v1098_v25 = vadd.f32 %v2113_v16, %v1097_v24  ;;  %v1735_v26 = vpop.f32.mrb[11].mxu1 }
 0xe95   :  { %1109 = vrot.lane.b32.xlu1 %v1098_v25, %s1985_s1  ;;  %v1101_v28 = vadd.f32 %v1098_v25, %v1023_v27 }
 0xe97   :  { %v1515_v29 = vmul.f32 -1.442695, %v1101_v28 }
 0xe99   :  { %1914 = vpow2.f32 %v1515_v29 }
 0xea3   :  { %v1915_v30 = vpop.eup %1914 }
 0xea4   :  { %v1105_v31 = vadd.f32 1.0, %v1915_v30 }
 0xea6   :  { %1916 = vrcp.f32 %v1105_v31 }
 0xeb0   :  { %v1917_v32 = vpop.eup %1916 }
 0xeb1   :  { %v1119_v39 = vsub.f32 1.0, %v1917_v32  ;;  %v1125_v41 = vmul.f32 %v1917_v32, %v950_v19 }
 0xf07   :  { %v1110_v33 = vpop.permute.xlu1 %1109 }
 0xf08   :  { %v1112_v34 = vmul.f32 %v1917_v32, %v1110_v33 }
 0xf0a   :  { %1114 = vrot.lane.b32.xlu0 %v1112_v34, %s1985_s1 }
 0xf7c   :  { %v1115_v35 = vpop.permute.xlu0 %1114 }
 0xf7d   :  { %v1117_v36 = vadd.f32 %v1115_v35, %v1023_v27 }
 0xf7f   :  { %1918 = vtanh.f32 %v1117_v36 }
 0xf89   :  { %v1919_v37 = vpop.eup %1918 }
 0xf8a   :  { %1121 = vrot.lane.b32.xlu1 %v1919_v37, %s1986_s15 }
 0xffc   :  { %v1122_v40 = vpop.permute.xlu1 %1121 }
 0xffd   :  { %v1124_v42 = vmul.f32 %v1122_v40, %v1119_v39 }
 0xfff   :  { %v1126_v43 = vadd.f32 %v1125_v41, %v1124_v42 }
0x1001   :  { %1203 = vrot.lane.b32.xlu0 %v1126_v43, %s1986_s15 }
0x1073   :  { %v1204_v44 = vpop.permute.xlu0 %1203 }
0x1074   :  { %1756 = vmatmul.mubr.msk.f32.vlgmr.msra.gmra.mrb[12].mxu1 %vm65_vm1, %v1204_v44 }
0x1075   :  { %1872 = vmatpush3.bf16.msra.mxu1 %v2073_v9  ;;  %1777 = vmatprep.mubr.msk.f32.mxu1 %vm1983_vm0, %v1984_v1 }
0x1076   :  { %1873 = vmatprep.subr.bf16.mxu1 %v1982_v0 }
0x1079   :  { %1875 = vmatpush3.bf16.msra.mxu1 %v2086_v13 }
0x1147   :  { %v1273_v45 = vpop.f32.mrb[12].mxu1 }
0x1148   :  { %v1274_v46 = vadd.f32 %v2113_v16, %v1273_v45  ;;  %v1757_v47 = vpop.f32.mrb[13].mxu1 }
0x114a   :  { %1285 = vrot.lane.b32.xlu1 %v1274_v46, %s1985_s1  ;;  %v1277_v49 = vadd.f32 %v1274_v46, %v1199_v48 }
0x114c   :  { %v1519_v50 = vmul.f32 -1.442695, %v1277_v49 }
0x114e   :  { %1920 = vpow2.f32 %v1519_v50 }
0x1158   :  { %v1921_v9 = vpop.eup %1920 }
0x1159   :  { %v1281_v51 = vadd.f32 1.0, %v1921_v9 }
0x115b   :  { %1922 = vrcp.f32 %v1281_v51 }
0x1165   :  { %v1923_v1 = vpop.eup %1922 }
0x1166   :  { %v1295_v56 = vsub.f32 1.0, %v1923_v1  ;;  %v1301_v58 = vmul.f32 %v1923_v1, %v1126_v43 }
0x11bc   :  { %v1286_v0 = vpop.permute.xlu1 %1285 }
0x11bd   :  { %v1288_v52 = vmul.f32 %v1923_v1, %v1286_v0 }
0x11bf   :  { %1290 = vrot.lane.b32.xlu0 %v1288_v52, %s1985_s1 }
0x1231   :  { %v1291_v13 = vpop.permute.xlu0 %1290 }
0x1232   :  { %v1293_v53 = vadd.f32 %v1291_v13, %v1199_v48 }
0x1234   :  { %1924 = vtanh.f32 %v1293_v53 }
0x123e   :  { %v1925_v54 = vpop.eup %1924 }
0x123f   :  { %1297 = vrot.lane.b32.xlu1 %v1925_v54, %s1986_s15 }
0x12b1   :  { %v1298_v57 = vpop.permute.xlu1 %1297 }
0x12b2   :  { %v1300_v59 = vmul.f32 %v1298_v57, %v1295_v56 }
0x12b4   :  { %v1302_v60 = vadd.f32 %v1301_v58, %v1300_v59 }
0x12b6   :  { %1379 = vrot.lane.b32.xlu0 %v1302_v60, %s1986_s15 }
0x1328   :  { %v1380_v61 = vpop.permute.xlu0 %1379 }
0x1329   :  { %1778 = vmatmul.mubr.msk.f32.vlgmr.msra.gmra.mrb[14].mxu1 %vm65_vm1, %v1380_v61 }
0x13fc   :  { %v1449_v2 = vpop.f32.mrb[14].mxu1 }
0x13fd   :  { %v1450_v3 = vadd.f32 %v2113_v16, %v1449_v2  ;;  %v1779_v4 = vpop.f32.mrb[15].mxu1 }
0x13ff   :  { %1461 = vrot.lane.b32.xlu1 %v1450_v3, %s1985_s1  ;;  %v1453_v7 = vadd.f32 %v1450_v3, %v1375_v6 }
0x1401   :  { %v1523_v8 = vmul.f32 -1.442695, %v1453_v7 }
0x1403   :  { %1926 = vpow2.f32 %v1523_v8 }
0x140d   :  { %v1927_v10 = vpop.eup %1926 }
0x140e   :  { %v1457_v11 = vadd.f32 1.0, %v1927_v10 }
0x1410   :  { %1928 = vrcp.f32 %v1457_v11 }
0x141a   :  { %v1929_v14 = vpop.eup %1928 }
0x141b   :  { %v1471_v20 = vsub.f32 1.0, %v1929_v14  ;;  %v1477_v22 = vmul.f32 %v1929_v14, %v1302_v60 }
0x1471   :  { %v1462_v15 = vpop.permute.xlu1 %1461 }
0x1472   :  { %v1464_v17 = vmul.f32 %v1929_v14, %v1462_v15 }
0x1474   :  { %1466 = vrot.lane.b32.xlu0 %v1464_v17, %s1985_s1 }
0x14e6   :  { %v1467_v18 = vpop.permute.xlu0 %1466 }
0x14e7   :  { %v1469_v19 = vadd.f32 %v1467_v18, %v1375_v6 }
0x14e9   :  { %1930 = vtanh.f32 %v1469_v19 }
0x14f3   :  { %v1931_v16 = vpop.eup %1930 }
0x14f4   :  { %1473 = vrot.lane.b32.xlu1 %v1931_v16, %s1986_s15 }
0x1566   :  { %v1474_v21 = vpop.permute.xlu1 %1473 }
0x1567   :  { %v1476_v23 = vmul.f32 %v1474_v21, %v1471_v20 }
0x1569   :  { %v1478_v24 = vadd.f32 %v1477_v22, %v1476_v23 }
0x156b   :  { %1480 = vrot.lane.b32.xlu0 %v1478_v24, %s1986_s15 }
0x15dd   :  { %v1481_v25 = vpop.permute.xlu0 %1480 }
0x15de   :  { %1484 = vst.msk [vmem:[%s2279_s6] sm:$0x3] %vm1483_vm2, %v1481_v25 }
0x15df   :  { %1489 = vsyncpa [#allocation3], 1 }
0x15e0   :  { %1490 = vsyncpa [#allocation5], 1 }

// kernel: body.3
= control target key start
LH: loop header
LB: loop body
LE: loop exit
PB: predicated region body
PF: predicated region fallthrough
CT: control target
= control target key end

     0   :  { %s2358_s0 = inlined_call_operand.vmem [shape: f32[2,8,32], index: 0, kind: input, shape index: {}]   ;;  %s2359_s1 = inlined_call_operand.vmem [shape: f32[2,8,32], index: 1, kind: input, shape index: {}]   ;;  %s2360_s2 = inlined_call_operand.vmem [shape: f32[2,8], index: 2, kind: input, shape index: {}]   ;;  %s2361_s3 = inlined_call_operand.vmem [shape: f32[2,8,3], index: 3, kind: input, shape index: {}]   ;;  %s2362_s4 = inlined_call_operand.vmem [shape: f32[2,32], index: 4, kind: input, shape index: {}]   ;;  %s2363_s5 = inlined_call_operand.vmem [shape: f32[2,32], index: 5, kind: input, shape index: {}]   ;;  %s2364_s6 = inlined_call_operand.vmem [shape: f32[2,32], index: 6, kind: input, shape index: {}]   ;;  %s2365_s7 = inlined_call_operand.vmem [shape: f32[2,32], index: 7, kind: input, shape index: {}]   ;;  %s2366_s8 = inlined_call_operand.vmem [shape: f32[3,32], index: 8, kind: input, shape index: {}]   ;;  %s2367_s9 = inlined_call_operand.vmem [shape: f32[32,96], index: 9, kind: input, shape index: {}]   ;;  %s2368_s10 = inlined_call_operand.vmem [shape: f32[32,96], index: 10, kind: input, shape index: {}]   ;;  %s2369_s11 = inlined_call_operand.vmem [shape: f32[1,96], index: 11, kind: input, shape index: {}]   ;;  %s2370_s12 = inlined_call_operand.vmem [shape: f32[1,96], index: 12, kind: input, shape index: {}]   ;;  %s2371_s13 = inlined_call_operand.vmem [shape: f32[32,64], index: 13, kind: input, shape index: {}]   ;;  %s2372_s14 = inlined_call_operand.vmem [shape: f32[32,32], index: 14, kind: input, shape index: {}]   ;;  %s2373_s15 = inlined_call_operand.vmem [shape: f32[32,32], index: 15, kind: input, shape index: {}]   ;;  %s2374_s16 = inlined_call_operand.vmem [shape: f32[1,32], index: 16, kind: input, shape index: {}]   ;;  %s2375_s17 = inlined_call_operand.vmem [shape: f32[1,32], index: 17, kind: input, shape index: {}]   ;;  %s2376_s18 = inlined_call_operand.vmem [shape: f32[32,32], index: 18, kind: input, shape index: {}]   ;;  %s2377_s19 = inlined_call_operand.vmem [shape: f32[32,32], index: 19, kind: input, shape index: {}]   ;;  %s2378_s20 = inlined_call_operand.vmem [shape: f32[32,32], index: 20, kind: input, shape index: {}]   ;;  %s2379_s21 = inlined_call_operand.vmem [shape: f32[1,32], index: 21, kind: input, shape index: {}]   ;;  %s2380_s22 = inlined_call_operand.vmem [shape: s32[2,1], index: 22, kind: output, shape index: {0}]   ;;  %s2381_s23 = inlined_call_operand.vmem [shape: f32[2,1], index: 23, kind: output, shape index: {1}]   ;;  %s2382_s24 = inlined_call_operand.hbm [shape: f32[2,8], index: 24, kind: output, shape index: {2}]   ;;  %s2383_s25 = inlined_call_operand.vmem [shape: f32[2,8,3], index: 25, kind: output, shape index: {3}]   ;;  %s2384_s26 = inlined_call_operand.vmem [shape: f32[2,8,32], index: 26, kind: output, shape index: {4}]   ;;  %s2385_s27 = inlined_call_operand.vmem [shape: f32[2,32], index: 27, kind: output, shape index: {5}]   ;;  %s2386_s28 = inlined_call_operand.vmem [shape: f32[2,32], index: 28, kind: output, shape index: {6}]  }
   0x1   :  { %2393 = sst [smem:[#allocation5_spill]] %s2358_s0 }
   0x2   :  { %2394 = sst [smem:[#allocation6_spill]] %s2359_s1 }
   0x3   :  { %2395 = sst [smem:[#allocation7_spill]] %s2360_s2 }
   0x4   :  { %2396 = sst [smem:[#allocation8_spill]] %s2361_s3 }
   0x5   :  { %2397 = sst [smem:[#allocation9_spill]] %s2362_s4 }
   0x6   :  { %2398 = sst [smem:[#allocation10_spill]] %s2363_s5 }
   0x7   :  { %2399 = sst [smem:[#allocation11_spill]] %s2364_s6 }
   0x8   :  { %2400 = sst [smem:[#allocation12_spill]] %s2365_s7 }
   0x9   :  { %2401 = sst [smem:[#allocation13_spill]] %s2366_s8 }
   0xa   :  { %2402 = sst [smem:[#allocation14_spill]] %s2367_s9 }
   0xb   :  { %2403 = sst [smem:[#allocation15_spill]] %s2368_s10 }
   0xc   :  { %2404 = sst [smem:[#allocation16_spill]] %s2369_s11 }
   0xd   :  { %2405 = sst [smem:[#allocation17_spill]] %s2370_s12 }
   0xe   :  { %s2406_s9 = sld [smem:[#allocation14_spill]]  ;;  %s2407_s0 = sld [smem:[#allocation15_spill]]  ;;  %v1815_v3 = vmov 0.0|0.0   ;;  %vm1816_vm0 = vmmov 0   ;;  %v1817_v11 = vmov 0.0  }
   0xf   :  { %1672 = vmatprep.subr.bf16.mxu0 %v1815_v3  ;;  %1678 = vmatprep.subr.bf16.mxu1 %v1815_v3 }
  0x10   :  { %1581 = vmatprep.mubr.msk.f32.mxu0 %vm1816_vm0, %v1817_v11  ;;  %1592 = vmatprep.mubr.msk.f32.mxu1 %vm1816_vm0, %v1817_v11 }
  0x14   :  { %v84_v0 = vld [vmem:[%s2406_s9] sm:$0xff]  ;;  %v85_v1 = vld [vmem:[%s2406_s9 + $0x8] sm:$0xff]  ;;  %v86_v6 = vld [vmem:[%s2406_s9 + $0x10] sm:$0xff] }
  0x15   :  { %v88_v2 = vld [vmem:[%s2407_s0] sm:$0xff]  ;;  %v1673_v4 = vpack.c.bf16 %v85_v1, %v84_v0  ;;  %v89_v5 = vld [vmem:[%s2407_s0 + $0x8] sm:$0xff]  ;;  %v87_v7 = vld [vmem:[%s2406_s9 + $0x18] sm:$0xff] }
  0x16   :  { %v1679_v8 = vpack.c.bf16 %v89_v5, %v88_v2  ;;  %v90_v9 = vld [vmem:[%s2407_s0 + $0x10] sm:$0xff]  ;;  %v91_v10 = vld [vmem:[%s2407_s0 + $0x18] sm:$0xff]  ;;  %v1676_v12 = vpack.c.bf16 %v87_v7, %v86_v6 }
  0x17   :  { %1674 = vmatpush3.bf16.msra.mxu0 %v1673_v4 }
  0x18   :  { %34 = vsyncpa [#allocation3], 0  ;;  %1680 = vmatpush3.bf16.msra.mxu1 %v1679_v8  ;;  %1675 = vmatprep.subr.bf16.mxu0 %v1815_v3  ;;  %v1682_v13 = vpack.c.bf16 %v91_v10, %v90_v9  ;;  %s2408_s6 = sld [smem:[#allocation9_spill]]  ;;  %vm100_vm1 = vcmask 261120   ;;  %s2409_s11 = sld [smem:[#allocation10_spill]]  ;;  %v288_v16 = vld [vmem:[%s2371_s13] sm:$0xff]  ;;  %v531_v52 = vlaneseq }
  0x19   :  { %1681 = vmatprep.subr.bf16.mxu1 %v1815_v3  ;;  %v289_v17 = vld [vmem:[%s2371_s13 + $0x8] sm:$0xff]  ;;  %v290_v19 = vld [vmem:[%s2371_s13 + $0x10] sm:$0xff]  ;;  %v291_v20 = vld [vmem:[%s2371_s13 + $0x18] sm:$0xff]  ;;  %s2410_s3 = sld [smem:[#allocation5_spill]]  ;;  %s2411_s5 = sld [smem:[#allocation17_spill]]  ;;  %vm286_vm2 = vcmask 254976  }
  0x1a   :  { %v1684_v18 = vpack.c.bf16 %v289_v17, %v288_v16  ;;  %v1688_v21 = vpack.c.bf16 %v291_v20, %v290_v19  ;;  %v450_v23 = vld [vmem:[%s2373_s15] sm:$0xff]  ;;  %v451_v25 = vld [vmem:[%s2373_s15 + $0x8] sm:$0xff]  ;;  %v452_v27 = vld [vmem:[%s2373_s15 + $0x10] sm:$0xff]  ;;  %s2412_s9 = sld [smem:[#allocation12_spill]]  ;;  %s2413_s0 = sld [smem:[#allocation16_spill]]  ;;  %v2078_v56 = vshrl.u32 %v531_v52, 7 }
  0x1b   :  { %1677 = vmatpush3.bf16.msra.mxu0 %v1676_v12  ;;  %v1699_v26 = vpack.c.bf16 %v451_v25, %v450_v23  ;;  %v453_v28 = vld [vmem:[%s2373_s15 + $0x18] sm:$0xff]  ;;  %v1819_v50 = vmov 1966171168   ;;  %s1821_s13 = smov 32   ;;  %v373_v63 = vld [vmem:[%s2372_s14] sm:$0xff]  ;;  %v374_v0 = vld [vmem:[%s2372_s14 + $0x8] sm:$0xff] }
  0x1c   :  { %1683 = vmatpush3.bf16.msra.mxu1 %v1682_v13  ;;  %1685 = vmatprep.subr.bf16.mxu0 %v1684_v18  ;;  %v1702_v29 = vpack.c.bf16 %v453_v28, %v452_v27  ;;  %v529_v51 = vunpack.c.l.s4 %v1819_v50  ;;  %v2086_v60 = vsub.s32 0, %v2078_v56  ;;  %v1509_v1 = vld [vmem:[%s2375_s17] ss:$0 sm:$0xff]  ;;  %v1693_v2 = vpack.c.bf16 %v374_v0, %v373_v63  ;;  %v375_v4 = vld [vmem:[%s2372_s14 + $0x10] sm:$0xff]  ;;  %v376_v5 = vld [vmem:[%s2372_s14 + $0x18] sm:$0xff]  ;;  %s2416_s1 = sld [smem:[#allocation8_spill]] }
  0x1d   :  { %1692 = vmatprep.subr.bf16.mxu1 %v1815_v3  ;;  %v1696_v6 = vpack.c.bf16 %v376_v5, %v375_v4  ;;  %v2136_v50 = vand.u32 127, %v531_v52  ;;  %vm657_vm3 = vcmask 1041409   ;;  %vm660_vm4 = vcmask 58368   ;;  %s1826_s14 = smov [#allocation2]  }
  0x1e   :  { %v82_v14 = vld [vmem:[%s2408_s6] sm:$0x3]  ;;  %v530_v55 = vunpack.c.0.s8 %v529_v51  ;;  %v1822_v4 = vmov 0   ;;  %v2153_v5 = vsub.s32 1, %v2078_v56  ;;  %vm1291_vm9 = vcmask 1024   ;;  %s1471_s17 = sshll.u32 %s1826_s14, 4  ;;  %s1472_s17 = int_to_ptr.vmem [resolvable:$true] %s1471_s17 }
  0x1f   :  { %v2010_v15 = vld [vmem:[%s2409_s11] sm:$0x3]  ;;  %1582 = vmatmul.mubr.msk.f32.vlgmr.msra.gmra.mrb[0].mxu0 %vm100_vm1, %v82_v14  ;;  %v2043_v24 = vld [vmem:[%s2410_s3 + $0x8] sm:$0xff]  ;;  %s1820_s11 = smov 96   ;;  %v2140_v51 = vsub.s32 %v2136_v50, %v2078_v56  ;;  %1743 = vset.pattern.permute.xlu0 %v1822_v4  ;;  %vm1263_vm6 = vcmp.eq.s32.totalorder %v2136_v50, 7  ;;  %p1796_p1 = scmp.lt.s32.totalorder %s1472_s17, %s1472_s17 }
  0x20   :  { %1593 = vmatmul.mubr.msk.f32.vlgmr.msra.gmra.mrb[0].mxu1 %vm100_vm1, %v2010_v15  ;;  %1687 = vmatpush3.bf16.msra.mxu0 %v1684_v18  ;;  %v2033_v22 = vld [vmem:[%s2410_s3] sm:$0xff]  ;;  %s1818_s3 = smov 64   ;;  %v2081_v57 = vsub.s32 %v530_v55, %v2078_v56 }
  0x21   :  { %1614 = vmatprep.mubr.msk.f32.mxu1 %vm1816_vm0, %v1817_v11  ;;  %1689 = vmatprep.subr.bf16.mxu0 %v1688_v21  ;;  %v1501_v30 = vld [vmem:[%s2411_s5] ss:$0 sm:$0xff] }
  0x22   :  { %1603 = vmatprep.mubr.msk.f32.mxu0 %vm100_vm1, %v2033_v22  ;;  %v449_v36 = vld [vmem:[%s2412_s9] sm:$0x3]  ;;  %1694 = vmatpush3.bf16.msra.mxu1 %v1693_v2 }
  0x23   :  { %v1499_v37 = vld [vmem:[%s2413_s0] ss:$0 sm:$0xff]  ;;  %1695 = vmatprep.subr.bf16.mxu1 %v1815_v3  ;;  %1742 = vset.pattern.permute.xlu1 %v1822_v4 }
  0x24   :  { %1691 = vmatpush3.bf16.msra.mxu0 %v1688_v21 }
  0x25   :  { %1698 = vmatprep.subr.bf16.mxu0 %v1815_v3 }
  0x26   :  { %1697 = vmatpush3.bf16.msra.mxu1 %v1696_v6 }
  0x27   :  { %1604 = vmatmul.mubr.msk.f32.vlgmr.msra.gmra.mrb[2].mxu0 %vm100_vm1, %v2043_v24 }
  0x28   :  { %1700 = vmatpush3.bf16.msra.mxu0 %v1699_v26  ;;  %1625 = vmatprep.mubr.msk.f32.mxu0 %vm1816_vm0, %v1817_v11 }
  0x29   :  { %1701 = vmatprep.subr.bf16.mxu0 %v1815_v3 }
  0x2c   :  { %1703 = vmatpush3.bf16.msra.mxu0 %v1702_v29 }
  0x2d   :  { %1712 = vmatprep.subr.bf16.mxu0 %v1815_v3 }
  0x2f   :  { %1626 = vmatmul.mubr.msk.f32.vlgmr.msra.gmra.mrb[4].mxu0 %vm100_vm1, %v449_v36 }
  0x30   :  { %1647 = vmatprep.mubr.msk.f32.mxu0 %vm1816_vm0, %v1817_v11 }
  0xf2   :  { %v170_v31 = vpop.f32.mrb[0].mxu0 }
  0xf3   :  { %v249_v32 = vpop.f32.mrb[0].mxu1  ;;  %v1583_v33 = vpop.f32.mrb[1].mxu0  ;;  %v171_v38 = vadd.f32 %v1499_v37, %v170_v31 }
  0xf4   :  { %v250_v34 = vadd.f32 %v1501_v30, %v249_v32  ;;  %v1594_v35 = vpop.f32.mrb[1].mxu1 }
  0xf6   :  { %261 = vrot.lane.b32.xlu0 %v250_v34, %s1818_s3  ;;  %v253_v39 = vadd.f32 %v250_v34, %v171_v38 }
  0xf8   :  { %v1503_v40 = vmul.f32 -1.442695, %v253_v39  ;;  %v1508_v39 = vld [vmem:[%s2374_s16] ss:$0 sm:$0xff] }
  0xfa   :  { %1751 = vpow2.f32 %v1503_v40  ;;  %v2073_v46 = vpop.f32.mrb[2].mxu0 }
  0xfb   :  { %v2075_v47 = vpop.f32.mrb[3].mxu0 }
 0x102   :  { %v523_v48 = vpop.f32.mrb[4].mxu0 }
 0x103   :  { %v1627_v49 = vpop.f32.mrb[5].mxu0  ;;  %v571_v58 = vrot.slane %v523_v48, %v2081_v57 }
 0x104   :  { %v1752_v41 = vpop.eup %1751 }
 0x105   :  { %v257_v42 = vadd.f32 1.0, %v1752_v41  ;;  %v579_v61 = vrot.slane %v571_v58, %v2081_v57  ;;  %v572_v8 = vcombine.high %v571_v58, %v571_v58 }
 0x107   :  { %1753 = vrcp.f32 %v257_v42  ;;  %v590_v62 = vrot.slane %v579_v61, %v2086_v60  ;;  %v586_v12 = vrot.slane %v572_v8, %v2081_v57 }
 0x109   :  { %v594_v17 = vrot.slane %v586_v12, %v2086_v60 }
 0x111   :  { %v1754_v43 = vpop.eup %1753 }
 0x112   :  { %v271_v9 = vsub.f32 1.0, %v1754_v43 }
 0x168   :  { %v262_v44 = vpop.permute.xlu0 %261 }
 0x169   :  { %v264_v45 = vmul.f32 %v1754_v43, %v262_v44 }
 0x16b   :  { %266 = vrot.lane.b32.xlu0 %v264_v45, %s1818_s3 }
 0x1dd   :  { %v267_v53 = vpop.permute.xlu0 %266 }
 0x1de   :  { %v269_v54 = vadd.f32 %v267_v53, %v171_v38 }
 0x1e0   :  { %1755 = vtanh.f32 %v269_v54 }
 0x1ea   :  { %v1756_v59 = vpop.eup %1755 }
 0x1eb   :  { %273 = vrot.lane.b32.xlu1 %v1756_v59, %s1820_s11 }
 0x1ef   :  { %277 = vrot.lane.b32.xlu1 %v2010_v15, %s1821_s13 }
 0x1f3   :  { %595 = vrot.lane.b32.xlu1 %v590_v62, %s1821_s13 }
 0x1f7   :  { %626 = vrot.lane.b32.xlu1 %v1509_v1, %s1821_s13 }
 0x25d   :  { %v274_v7 = vpop.permute.xlu1 %273 }
 0x25e   :  { %v276_v13 = vmul.f32 %v274_v7, %v271_v9 }
 0x261   :  { %v278_v10 = vpop.permute.xlu1 %277 }
 0x262   :  { %v280_v14 = vmul.f32 %v1754_v43, %v278_v10 }
 0x264   :  { %v281_v15 = vadd.f32 %v280_v14, %v276_v13 }
 0x265   :  { %v596_v16 = vpop.permute.xlu1 %595 }
 0x266   :  { %283 = vrot.lane.b32.xlu0 %v281_v15, %s1820_s11  ;;  %v601_v18 = vadd.f32 %v596_v16, %v2075_v47 }
 0x268   :  { %1757 = vtanh.f32 %v601_v18 }
 0x269   :  { %v627_v19 = vpop.permute.xlu1 %626 }
 0x26a   :  { %597 = vrot.lane.b32.xlu0 %v594_v17, %s1821_s13  ;;  %s2415_s13 = sld [smem:[#allocation7_spill]] }
 0x272   :  { %v1758_v20 = vpop.eup %1757 }
 0x273   :  { %v629_v21 = vmul.f32 %v1758_v20, %v627_v19 }
 0x275   :  { %633 = vrot.lane.b32.xlu0 %v629_v21, %s1820_s11 }
 0x2d8   :  { %v284_v23 = vpop.permute.xlu0 %283 }
 0x2d9   :  { %287 = vst.msk [vmem:[%s2386_s28] sm:$0x3] %vm286_vm2, %v284_v23  ;;  %1615 = vmatmul.mubr.msk.f32.vlgmr.msra.gmra.mrb[2].mxu1 %vm100_vm1, %v284_v23 }
 0x2da   :  { %1636 = vmatprep.mubr.msk.f32.mxu1 %vm100_vm1, %v2033_v22 }
 0x2dc   :  { %v598_v25 = vpop.permute.xlu0 %597 }
 0x2dd   :  { %v602_v26 = vadd.f32 %v2073_v46, %v598_v25 }
 0x2df   :  { %1759 = vtanh.f32 %v602_v26 }
 0x2e7   :  { %v634_v45 = vpop.permute.xlu0 %633 }
 0x2e9   :  { %v1760_v27 = vpop.eup %1759 }
 0x2ea   :  { %v630_v28 = vmul.f32 %v1760_v27, %v627_v19 }
 0x2ec   :  { %635 = vrot.lane.b32.xlu1 %v630_v28, %s1820_s11 }
 0x3ac   :  { %v445_v29 = vpop.f32.mrb[2].mxu1 }
 0x3ad   :  { %v534_v30 = vrot.slane %v445_v29, %v2081_v57  ;;  %v1616_v31 = vpop.f32.mrb[3].mxu1 }
 0x3af   :  { %v535_v32 = vcombine.high %v534_v30, %v534_v30  ;;  %v542_v33 = vrot.slane %v534_v30, %v2081_v57 }
 0x3b1   :  { %v549_v34 = vrot.slane %v535_v32, %v2081_v57  ;;  %v553_v35 = vrot.slane %v542_v33, %v2086_v60 }
 0x3b3   :  { %v557_v36 = vrot.slane %v549_v34, %v2086_v60  ;;  %v560_v37 = vadd.f32 %v553_v35, %v2075_v47  ;;  %v639_v47 = vsel %vm100_vm1, %v634_v45, 0.0 }
 0x3b5   :  { %v561_v38 = vadd.f32 %v2073_v46, %v557_v36  ;;  %1761 = vtanh.f32 %v560_v37  ;;  %v636_v46 = vpop.permute.xlu1 %635 }
 0x3b6   :  { %v642_v49 = vsel %vm100_vm1, %v636_v46, 0.0  ;;  %v838_v46 = vld [vmem:[%s2376_s18 + $0x8] sm:$0xff] }
 0x3b7   :  { %1763 = vtanh.f32 %v561_v38 }
 0x3bf   :  { %v1762_v40 = vpop.eup %1761 }
 0x3c0   :  { %v613_v41 = vmul.f32 %v1762_v40, %v1508_v39 }
 0x3c1   :  { %v1764_v42 = vpop.eup %1763 }
 0x3c2   :  { %v615_v43 = vsel %vm100_vm1, %v613_v41, 0.0  ;;  %v614_v44 = vmul.f32 %v1764_v42, %v1508_v39 }
 0x3c3   :  { %616 = vadd.xlane.f32.xlu0 %v615_v43 }
 0x3c4   :  { %v618_v48 = vsel %vm100_vm1, %v614_v44, 0.0 }
 0x3c5   :  { %619 = vadd.xlane.f32.xlu1 %v618_v48 }
 0x3c7   :  { %640 = vadd.xlane.f32.xlu0 %v639_v47  ;;  %v837_v47 = vld [vmem:[%s2376_s18] sm:$0xff] }
 0x3cb   :  { %643 = vadd.xlane.f32.xlu0 %v642_v49 }
 0x450   :  { %v617_v53 = vpop.xlane.xlu0 %616 }
 0x451   :  { %v652_v55 = vrot.slane %v617_v53, %v2140_v51 }
 0x452   :  { %v620_v54 = vpop.xlane.xlu1 %619 }
 0x453   :  { %v656_v58 = vrot.slane %v620_v54, %v2140_v51 }
 0x454   :  { %v641_v59 = vpop.xlane.xlu0 %640 }
 0x455   :  { %v658_v61 = vsel %vm657_vm3, %v656_v58, %v652_v55  ;;  %v722_v63 = vrot.slane %v641_v59, %v2140_v51  ;;  %v840_v55 = vld [vmem:[%s2376_s18 + $0x18] sm:$0xff] }
 0x456   :  { %v661_v62 = vsel %vm660_vm4, %v658_v61, -inf }
 0x457   :  { %662 = vmax.xlane.f32.xlu1 %v661_v62  ;;  %v917_v62 = vld [vmem:[%s2378_s20] sm:$0xff] }
 0x458   :  { %v644_v52 = vpop.xlane.xlu0 %643 }
 0x459   :  { %v726_v0 = vrot.slane %v644_v52, %v2140_v51 }
 0x45b   :  { %v727_v1 = vsel %vm657_vm3, %v726_v0, %v722_v63  ;;  %v994_v63 = vld [vmem:[%s2377_s19] sm:$0xff] }
 0x45c   :  { %v729_v2 = vsel %vm660_vm4, %v727_v1, -inf }
 0x45d   :  { %730 = vmax.xlane.f32.xlu0 %v729_v2  ;;  %v995_v2 = vld [vmem:[%s2377_s19 + $0x8] sm:$0xff] }
 0x4e4   :  { %v663_v6 = vpop.xlane.xlu1 %662 }
 0x4e5   :  { %v668_v7 = vrot.slane %v663_v6, %v2086_v60  ;;  %v672_v8 = vrot.slane %v663_v6, %v2153_v5  ;;  %v1719_v6 = vpack.c.bf16 %v995_v2, %v994_v63  ;;  %v1823_v63 = vmov 7  }
 0x4e7   :  { %v675_v9 = vsub.f32 %v617_v53, %v668_v7  ;;  %v676_v10 = vsub.f32 %v620_v54, %v672_v8  ;;  %v1704_v53 = vpack.c.bf16 %v838_v46, %v837_v47  ;;  %v839_v54 = vld [vmem:[%s2376_s18 + $0x10] sm:$0xff] }
 0x4e8   :  { %v1708_v58 = vpack.c.bf16 %v840_v55, %v839_v54  ;;  %v919_v8 = vld [vmem:[%s2378_s20 + $0x10] sm:$0xff] }
 0x4e9   :  { %v677_v12 = vmul.f32 1.442695, %v675_v9  ;;  %v679_v13 = vmul.f32 1.442695, %v676_v10  ;;  %1705 = vmatprep.subr.bf16.mxu1 %v1704_v53  ;;  %v920_v9 = vld [vmem:[%s2378_s20 + $0x18] sm:$0xff]  ;;  %v996_v10 = vld [vmem:[%s2377_s19 + $0x10] sm:$0xff] }
 0x4ea   :  { %v731_v14 = vpop.xlane.xlu0 %730  ;;  %1707 = vmatpush3.bf16.msra.mxu1 %v1704_v53 }
 0x4eb   :  { %1765 = vpow2.f32 %v677_v12  ;;  %v736_v15 = vrot.slane %v731_v14, %v2086_v60  ;;  %v740_v16 = vrot.slane %v731_v14, %v2153_v5  ;;  %1709 = vmatprep.subr.bf16.mxu1 %v1708_v58  ;;  %v1716_v12 = vpack.c.bf16 %v920_v9, %v919_v8 }
 0x4ec   :  { %1767 = vpow2.f32 %v679_v13  ;;  %v997_v13 = vld [vmem:[%s2377_s19 + $0x18] sm:$0xff] }
 0x4ed   :  { %v743_v17 = vsub.f32 %v641_v59, %v736_v15  ;;  %v744_v18 = vsub.f32 %v644_v52, %v740_v16  ;;  %v918_v52 = vld [vmem:[%s2378_s20 + $0x8] sm:$0xff]  ;;  %v1722_v14 = vpack.c.bf16 %v997_v13, %v996_v10  ;;  %s2414_s20 = sld [smem:[#allocation11_spill]] }
 0x4ee   :  { %1711 = vmatpush3.bf16.msra.mxu1 %v1708_v58  ;;  %v1713_v1 = vpack.c.bf16 %v918_v52, %v917_v62 }
 0x4ef   :  { %v745_v56 = vmul.f32 1.442695, %v743_v17  ;;  %v747_v19 = vmul.f32 1.442695, %v744_v18  ;;  %1718 = vmatprep.subr.bf16.mxu1 %v1815_v3 }
 0x4f0   :  { %1714 = vmatpush3.bf16.msra.mxu0 %v1713_v1 }
 0x4f1   :  { %1769 = vpow2.f32 %v745_v56  ;;  %1637 = vmatmul.mubr.msk.f32.vlgmr.msra.gmra.mrb[4].mxu1 %vm100_vm1, %v2043_v24  ;;  %1715 = vmatprep.subr.bf16.mxu0 %v1815_v3 }
 0x4f2   :  { %1771 = vpow2.f32 %v747_v19  ;;  %1658 = vmatprep.mubr.msk.f32.mxu1 %vm1816_vm0, %v1817_v11  ;;  %1720 = vmatpush3.bf16.msra.mxu1 %v1719_v6 }
 0x4f3   :  { %1721 = vmatprep.subr.bf16.mxu1 %v1815_v3  ;;  %v916_v15 = vld [vmem:[%s2414_s20] sm:$0x3] }
 0x4f4   :  { %1717 = vmatpush3.bf16.msra.mxu0 %v1716_v12 }
 0x4f5   :  { %v1766_v20 = vpop.eup %1765  ;;  %1724 = vmatprep.subr.bf16.mxu0 %v1815_v3 }
 0x4f6   :  { %v1768_v21 = vpop.eup %1767  ;;  %684 = vperm.xlu1 %1742, %v1766_v20   ;;  %1723 = vmatpush3.bf16.msra.mxu1 %v1722_v14 }
 0x4f7   :  { %687 = vperm.xlu0 %1743, %v1768_v21   ;;  %1648 = vmatmul.mubr.msk.f32.vlgmr.msra.gmra.mrb[6].mxu0 %vm100_vm1, %v916_v15 }
 0x4f8   :  { %1726 = vmatpush3.bf16.msra.mxu0 %v1719_v6  ;;  %1669 = vmatprep.mubr.msk.f32.mxu0 %vm1816_vm0, %v1817_v11 }
 0x4f9   :  { %1727 = vmatprep.subr.bf16.mxu0 %v1815_v3 }
 0x4fb   :  { %v1770_v23 = vpop.eup %1769 }
 0x4fc   :  { %752 = vperm.xlu1 %1742, %v1770_v23   ;;  %v1772_v25 = vpop.eup %1771  ;;  %1729 = vmatpush3.bf16.msra.mxu0 %v1722_v14 }
 0x500   :  { %755 = vperm.xlu1 %1742, %v1772_v25  }
 0x575   :  { %v685_v26 = vpop.permute.xlu1 %684 }
 0x576   :  { %v692_v27 = vrot.slane %v685_v26, %v2140_v51  ;;  %v688_v28 = vpop.permute.xlu0 %687 }
 0x577   :  { %v696_v29 = vrot.slane %v688_v28, %v2140_v51 }
 0x579   :  { %v697_v30 = vsel %vm657_vm3, %v696_v29, %v692_v27 }
 0x57a   :  { %v699_v31 = vsel %vm660_vm4, %v697_v30, 0.0 }
 0x57b   :  { %700 = vadd.xlane.f32.xlu1 %v699_v31  ;;  %v753_v32 = vpop.permute.xlu1 %752 }
 0x57c   :  { %v760_v34 = vrot.slane %v753_v32, %v2140_v51 }
 0x57f   :  { %v756_v33 = vpop.permute.xlu1 %755 }
 0x580   :  { %v764_v35 = vrot.slane %v756_v33, %v2140_v51 }
 0x582   :  { %v765_v36 = vsel %vm657_vm3, %v764_v35, %v760_v34 }
 0x583   :  { %v767_v37 = vsel %vm660_vm4, %v765_v36, 0.0 }
 0x584   :  { %768 = vadd.xlane.f32.xlu0 %v767_v37 }
 0x5ca   :  { %v990_v62 = vpop.f32.mrb[6].mxu0 }
 0x5cb   :  { %v1649_v52 = vpop.f32.mrb[7].mxu0 }
 0x608   :  { %v701_v38 = vpop.xlane.xlu1 %700 }
 0x609   :  { %v706_v39 = vrot.slane %v701_v38, %v2086_v60  ;;  %v710_v40 = vrot.slane %v701_v38, %v2153_v5 }
 0x60b   :  { %1773 = vrcp.f32 %v706_v39 }
 0x60c   :  { %1775 = vrcp.f32 %v710_v40 }
 0x611   :  { %v769_v41 = vpop.xlane.xlu0 %768 }
 0x612   :  { %v774_v42 = vrot.slane %v769_v41, %v2086_v60  ;;  %v778_v43 = vrot.slane %v769_v41, %v2153_v5 }
 0x614   :  { %1777 = vrcp.f32 %v774_v42 }
 0x615   :  { %v1774_v44 = vpop.eup %1773  ;;  %1779 = vrcp.f32 %v778_v43 }
 0x616   :  { %v1776_v45 = vpop.eup %1775  ;;  %v714_v48 = vmul.f32 %v1774_v44, %v1766_v20 }
 0x617   :  { %v716_v49 = vmul.f32 %v1776_v45, %v1768_v21 }
 0x618   :  { %787 = vperm.xlu1 %1742, %v714_v48  }
 0x619   :  { %792 = vperm.xlu0 %1743, %v716_v49  }
 0x61e   :  { %v1778_v59 = vpop.eup %1777 }
 0x61f   :  { %v782_v61 = vmul.f32 %v1778_v59, %v1770_v23  ;;  %v1780_v0 = vpop.eup %1779  ;;  %v1638_v59 = vpop.f32.mrb[4].mxu1 }
 0x620   :  { %v784_v7 = vmul.f32 %v1780_v0, %v1772_v25 }
 0x621   :  { %813 = vperm.xlu1 %1742, %v782_v61   ;;  %v907_v61 = vpop.f32.mrb[5].mxu1 }
 0x625   :  { %818 = vperm.xlu1 %1742, %v784_v7  }
 0x629   :  { %1744 = vset.pattern.permute.xlu1 %v1823_v63 }
 0x697   :  { %v788_v16 = vpop.permute.xlu1 %787 }
 0x698   :  { %v795_v17 = vmul.f32 %v788_v16, %v2033_v22  ;;  %v793_v18 = vpop.permute.xlu0 %792 }
 0x699   :  { %v796_v56 = vmul.f32 %v793_v18, %v2043_v24 }
 0x69a   :  { %v797_v19 = vsel %vm100_vm1, %v795_v17, 0.0 }
 0x69b   :  { %v798_v20 = vrot.slane %v797_v19, 4  ;;  %v804_v21 = vsel %vm100_vm1, %v796_v56, 0.0 }
 0x69c   :  { %v805_v23 = vrot.slane %v804_v21, 4 }
 0x69d   :  { %v799_v25 = vadd.f32 %v798_v20, %v797_v19 }
 0x69e   :  { %v806_v26 = vadd.f32 %v805_v23, %v804_v21  ;;  %v1514_v23 = vld [vmem:[%s2379_s21] ss:$0 sm:$0xff] }
 0x69f   :  { %v800_v27 = vrot.slane %v799_v25, 2 }
 0x6a0   :  { %v807_v28 = vrot.slane %v806_v26, 2  ;;  %v814_v29 = vpop.permute.xlu1 %813 }
 0x6a1   :  { %v801_v30 = vadd.f32 %v800_v27, %v799_v25  ;;  %v821_v3 = vmul.f32 %v814_v29, %v2033_v22 }
 0x6a2   :  { %v808_v31 = vadd.f32 %v807_v28, %v806_v26 }
 0x6a3   :  { %v802_v32 = vrot.slane %v801_v30, 1  ;;  %v823_v33 = vsel %vm100_vm1, %v821_v3, 0.0 }
 0x6a4   :  { %v809_v34 = vrot.slane %v808_v31, 1  ;;  %v824_v35 = vrot.slane %v823_v33, 4  ;;  %v819_v36 = vpop.permute.xlu1 %818 }
 0x6a5   :  { %v803_v37 = vadd.f32 %v802_v32, %v801_v30  ;;  %v822_v38 = vmul.f32 %v819_v36, %v2043_v24 }
 0x6a6   :  { %v810_v39 = vadd.f32 %v809_v34, %v808_v31  ;;  %v825_v40 = vadd.f32 %v824_v35, %v823_v33 }
 0x6a7   :  { %v830_v41 = vsel %vm100_vm1, %v822_v38, 0.0  ;;  %v81_v38 = vld [vmem:[%s2415_s13] sm:$0x3] }
 0x6a8   :  { %v826_v42 = vrot.slane %v825_v40, 2  ;;  %v831_v43 = vrot.slane %v830_v41, 4  ;;  %v1001_v44 = vsel %vm657_vm3, %v810_v39, %v803_v37  ;;  %vm1249_vm5 = vcmp.le.f32.partialorder %v81_v38, 0.0 }
 0x6a9   :  { %1659 = vmatmul.mubr.msk.f32.vlgmr.msra.gmra.mrb[6].mxu1 %vm100_vm1, %v1001_v44  ;;  %v1265_v39 = vsel %vm1249_vm5, 1, %v1822_v4 }
 0x6aa   :  { %v827_v45 = vadd.f32 %v826_v42, %v825_v40  ;;  %v832_v48 = vadd.f32 %v831_v43, %v830_v41 }
 0x6ac   :  { %v833_v47 = vrot.slane %v832_v48, 2  ;;  %v828_v46 = vrot.slane %v827_v45, 1 }
 0x6ae   :  { %v834_v49 = vadd.f32 %v833_v47, %v832_v48  ;;  %v829_v54 = vadd.f32 %v828_v46, %v827_v45 }
 0x6b0   :  { %v835_v53 = vrot.slane %v834_v49, 1 }
 0x6b2   :  { %v836_v55 = vadd.f32 %v835_v53, %v834_v49 }
 0x6b4   :  { %v1127_v58 = vsel %vm657_vm3, %v836_v55, %v829_v54  ;;  %v1264_v54 = vsel %vm1263_vm6, 1.0, %v1817_v11  ;;  %vm1391_vm6 = vcmask 7168  }
 0x6b5   :  { %1670 = vmatmul.mubr.msk.f32.vlgmr.msra.gmra.mrb[8].mxu0 %vm100_vm1, %v1127_v58 }
 0x77c   :  { %v1070_v0 = vpop.f32.mrb[6].mxu1 }
 0x77d   :  { %v1071_v1 = vadd.f32 %v1070_v0, %v990_v62  ;;  %v1660_v2 = vpop.f32.mrb[7].mxu1 }
 0x77f   :  { %v1081_v6 = vrot.slane %v1071_v1, %v2081_v57 }
 0x781   :  { %v1082_v7 = vcombine.high %v1081_v6, %v1081_v6  ;;  %v1089_v8 = vrot.slane %v1081_v6, %v2081_v57 }
 0x783   :  { %v1096_v9 = vrot.slane %v1082_v7, %v2081_v57  ;;  %v1100_v10 = vrot.slane %v1089_v8, %v2086_v60 }
 0x785   :  { %v1104_v12 = vrot.slane %v1096_v9, %v2086_v60  ;;  %v1107_v13 = vadd.f32 %v1100_v10, %v907_v61 }
 0x787   :  { %v1108_v14 = vadd.f32 %v1638_v59, %v1104_v12  ;;  %1781 = vtanh.f32 %v1107_v13 }
 0x788   :  { %v1196_v15 = vpop.f32.mrb[8].mxu0 }
 0x789   :  { %1783 = vtanh.f32 %v1108_v14  ;;  %v1197_v16 = vadd.f32 %v1196_v15, %v990_v62  ;;  %v1671_v17 = vpop.f32.mrb[9].mxu0 }
 0x78b   :  { %v1207_v18 = vrot.slane %v1197_v16, %v2081_v57 }
 0x78d   :  { %v1208_v56 = vcombine.high %v1207_v18, %v1207_v18  ;;  %v1215_v19 = vrot.slane %v1207_v18, %v2081_v57 }
 0x78f   :  { %v1222_v20 = vrot.slane %v1208_v56, %v2081_v57  ;;  %v1226_v21 = vrot.slane %v1215_v19, %v2086_v60 }
 0x791   :  { %v1782_v25 = vpop.eup %1781  ;;  %v1230_v26 = vrot.slane %v1222_v20, %v2086_v60  ;;  %v1233_v27 = vadd.f32 %v1226_v21, %v907_v61 }
 0x792   :  { %v1117_v28 = vmul.f32 %v1782_v25, %v1514_v23 }
 0x793   :  { %v1784_v29 = vpop.eup %1783  ;;  %v1234_v30 = vadd.f32 %v1638_v59, %v1230_v26  ;;  %1785 = vtanh.f32 %v1233_v27 }
 0x794   :  { %v1119_v3 = vsel %vm100_vm1, %v1117_v28, 0.0  ;;  %v1118_v31 = vmul.f32 %v1784_v29, %v1514_v23 }
 0x795   :  { %1787 = vtanh.f32 %v1234_v30  ;;  %1120 = vadd.xlane.f32.xlu1 %v1119_v3 }
 0x796   :  { %v1122_v57 = vsel %vm100_vm1, %v1118_v31, 0.0 }
 0x797   :  { %1123 = vadd.xlane.f32.xlu0 %v1122_v57 }
 0x79d   :  { %v1786_v32 = vpop.eup %1785 }
 0x79e   :  { %v1237_v33 = vmul.f32 %v1786_v32, %v1514_v23 }
 0x79f   :  { %v1788_v34 = vpop.eup %1787 }
 0x7a0   :  { %v1239_v35 = vsel %vm100_vm1, %v1237_v33, 0.0  ;;  %v1238_v36 = vmul.f32 %v1788_v34, %v1514_v23 }
 0x7a1   :  { %1240 = vadd.xlane.f32.xlu1 %v1239_v35  ;;  %v1372_v35 = vld [vmem:[%s2416_s1 + $0x8] sm:$0xff] }
 0x7a2   :  { %v1242_v37 = vsel %vm100_vm1, %v1238_v36, 0.0 }
 0x7a5   :  { %1243 = vadd.xlane.f32.xlu1 %v1242_v37 }
 0x7b6   :  { %1267 = vperm.xlu1 %1744, %v1265_v39  }
 0x7ba   :  { %1745 = vset.pattern.permute.xlu1 %v1822_v4 }
 0x822   :  { %v1121_v40 = vpop.xlane.xlu1 %1120 }
 0x823   :  { %v1245_v43 = vmul.f32 5.0, %v1121_v40 }
 0x824   :  { %v1124_v41 = vpop.xlane.xlu0 %1123 }
 0x825   :  { %v1246_v44 = vmul.f32 5.0, %v1124_v41 }
 0x82e   :  { %v1241_v42 = vpop.xlane.xlu1 %1240 }
 0x82f   :  { %v1247_v45 = vadd.f32 %v1245_v43, %v1241_v42 }
 0x831   :  { %v1255_v46 = vrot.slane %v1247_v45, %v2140_v51 }
 0x832   :  { %v1244_v48 = vpop.xlane.xlu1 %1243 }
 0x833   :  { %v1248_v47 = vadd.f32 %v1246_v44, %v1244_v48 }
 0x835   :  { %v1259_v49 = vrot.slane %v1248_v47, %v2140_v51 }
 0x836   :  { %v1268_v53 = vpop.permute.xlu1 %1267 }
 0x837   :  { %vm1269_vm7 = vcmp.eq.s32.totalorder %v1268_v53, 1  ;;  %v1260_v55 = vsel %vm657_vm3, %v1259_v49, %v1255_v46  ;;  %v1824_v46 = vmov 1  }
 0x838   :  { %v1262_v58 = vsel %vm1249_vm5, -inf, %v1260_v55  ;;  %v1825_v55 = vmov 2  }
 0x839   :  { %v1270_v59 = vsel %vm1269_vm7, %v1264_v54, %v1262_v58 }
 0x83a   :  { %v1271_v61 = vsel %vm660_vm4, %v1270_v59, -inf }
 0x83b   :  { %1272 = vmax.xlane.f32.xlu0 %v1271_v61 }
 0x8c8   :  { %v1273_v62 = vpop.xlane.xlu0 %1272 }
 0x8c9   :  { %vm1274_vm8 = vcmp.eq.f32.partialorder %v1270_v59, %v1273_v62  ;;  %1789 = vlog2.f32 %v1273_v62 }
 0x8ca   :  { %v1275_v52 = vsel %vm1274_vm8, %v2136_v50, 8  ;;  %vm1394_vm8 = vcmask 15360  }
 0x8cb   :  { %v1276_v63 = vsel %vm660_vm4, %v1275_v52, 2147483647 }
 0x8cc   :  { %v1278_v51 = vshra.s32 %v1276_v63, 16  ;;  %v1277_v6 = vand.u32 65535, %v1276_v63 }
 0x8ce   :  { %v1280_v0 = vcvt.s32.f32 %v1278_v51  ;;  %v1279_v8 = vcvt.s32.f32 %v1277_v6 }
 0x8d0   :  { %1281 = vmin.xlane.f32.xlu0 %v1280_v0 }
 0x8d3   :  { %v1790_v1 = vpop.eup %1789 }
 0x8d4   :  { %v1294_v2 = vmul.f32 0.6931472, %v1790_v1 }
 0x8d6   :  { %1295 = vst.msk [vmem:[%s2381_s23] sm:$0x3] %vm1291_vm9, %v1294_v2 }
 0x95d   :  { %v1282_v7 = vpop.xlane.xlu0 %1281 }
 0x95e   :  { %vm1283_vm10 = vcmp.eq.f32.partialorder %v1280_v0, %v1282_v7  ;;  %v1288_v10 = vcvt.f32.s32 %v1282_v7 }
 0x95f   :  { %v1284_v9 = vsel %vm1283_vm10, %v1279_v8, inf }
 0x960   :  { %1285 = vmin.xlane.f32.xlu0 %v1284_v9  ;;  %v1289_v13 = vshll.u32 %v1288_v10, 16 }
 0x9ed   :  { %v1286_v12 = vpop.xlane.xlu0 %1285 }
 0x9ee   :  { %v1287_v14 = vcvt.f32.s32 %v1286_v12 }
 0x9f0   :  { %v1290_v15 = vadd.s32 %v1289_v13, %v1287_v14 }
 0x9f2   :  { %1292 = vst.msk [vmem:[%s2380_s22] sm:$0x3] %vm1291_vm9, %v1290_v15  ;;  %vm1296_vm11 = vcmp.eq.s32.totalorder %v2136_v50, %v1290_v15 }
 0x9f3   :  { %v1516_v16 = vsel %vm1296_vm11, 1.0, %v1817_v11 }
 0x9f4   :  { %v1312_v17 = vrot.slane %v1516_v16, %v2153_v5  ;;  %v1305_v18 = vrot.slane %v1516_v16, %v2086_v60  ;;  %vm1299_vm12 = vcmp.gt.f32.partialorder %v1516_v16, 0.0 }
 0x9f5   :  { %v1300_v56 = vsel %vm1299_vm12, 0.0, %v81_v38 }
 0x9f6   :  { %1314 = vbcast.lane.b32.xlu1 %v1312_v17, 256  ;;  %1307 = vbcast.lane.b32.xlu0 %v1305_v18, 256  ;;  %1301 = vst.msk [vmem:[#allocation2] sm:$0x3] %vm660_vm4, %v1300_v56  ;;  %v1346_v19 = vrot.slane %v1300_v56, %v2086_v60  ;;  %v1353_v20 = vrot.slane %v1300_v56, %v2153_v5  ;;  %v1371_v5 = vld [vmem:[%s2416_s1] sm:$0xff] }
 0x9fa   :  { %1348 = vbcast.lane.b32.xlu1 %v1346_v19, 256 }
 0x9fe   :  { %1355 = vbcast.lane.b32.xlu1 %v1353_v20, 256 }
 0xa68   :  { %v1315_v21 = vpop.permute.xlu1 %1314  ;;  %v1308_v50 = vpop.permute.xlu0 %1307 }
 0xa69   :  { %v1317_v23 = vmul.f32 %v1315_v21, %v2043_v24  ;;  %v1316_v25 = vmul.f32 %v1308_v50, %v2033_v22 }
 0xa6b   :  { %v1325_v26 = vsel %vm100_vm1, %v1317_v23, 0.0  ;;  %v1318_v27 = vsel %vm100_vm1, %v1316_v25, 0.0 }
 0xa6c   :  { %v1319_v28 = vrot.slane %v1318_v27, 4  ;;  %v1349_v29 = vpop.permute.xlu1 %1348  ;;  %v1326_v60 = vrot.slane %v1325_v26, 4 }
 0xa6d   :  { %vm1359_vm13 = vcmp.eq.f32.partialorder %v1349_v29, 0.0  ;;  %vm1361_vm14 = vcmp.eq.f32.partialorder %v1349_v29, -2.0  ;;  %vm1365_vm15 = vcmp.eq.f32.partialorder %v1349_v29, 3.0  ;;  %vm1357_vm0 = vcmp.eq.f32.partialorder %v1349_v29, 1.0 }
 0xa6e   :  { %v1320_v30 = vadd.f32 %v1319_v28, %v1318_v27  ;;  %vm1363_vm4 = vmor %vm1359_vm13, %vm1361_vm14  ;;  %v1517_v3 = vsel %vm1357_vm0, 1.0, %v1817_v11  ;;  %v1519_v31 = vsel %vm1365_vm15, 1.0, %v1817_v11  ;;  %v1327_v33 = vadd.f32 %v1326_v60, %v1325_v26 }
 0xa6f   :  { %vm1367_vm5 = vmor %vm1363_vm4, %vm1365_vm15  ;;  %v1521_v57 = vsel %vm1363_vm4, 1.0, %v1817_v11  ;;  %vm1397_vm15 = vcmask 23552  }
 0xa70   :  { %v1356_v22 = vpop.permute.xlu1 %1355  ;;  %vm2286_vm7 = vmor %vm1357_vm0, %vm1367_vm5  ;;  %v1321_v34 = vrot.slane %v1320_v30, 2  ;;  %v1328_v48 = vrot.slane %v1327_v33, 2 }
 0xa71   :  { %vm1360_vm9 = vcmp.eq.f32.partialorder %v1356_v22, 0.0  ;;  %vm1362_vm10 = vcmp.eq.f32.partialorder %v1356_v22, -2.0  ;;  %vm1366_vm11 = vcmp.eq.f32.partialorder %v1356_v22, 3.0  ;;  %v1377_v32 = vsel %vm2286_vm7, %v1517_v3, %v1371_v5 }
 0xa72   :  { %1407 = vperm.xlu0 %1743, %v1377_v32   ;;  %vm1358_vm12 = vcmp.eq.f32.partialorder %v1356_v22, 1.0  ;;  %vm1364_vm13 = vmor %vm1360_vm9, %vm1362_vm10  ;;  %v1383_v36 = vsel %vm2286_vm7, %v1519_v31, %v1371_v5  ;;  %v1520_v40 = vsel %vm1366_vm11, 1.0, %v1817_v11  ;;  %v1389_v41 = vsel %vm2286_vm7, %v1521_v57, %v1371_v5 }
 0xa73   :  { %vm1368_vm14 = vmor %vm1364_vm13, %vm1366_vm11  ;;  %v1392_v37 = vsel %vm1391_vm6, %v1377_v32, %v1383_v36  ;;  %v1522_v38 = vsel %vm1364_vm13, 1.0, %v1817_v11  ;;  %v1518_v39 = vsel %vm1358_vm12, 1.0, %v1817_v11  ;;  %v1322_v47 = vadd.f32 %v1321_v34, %v1320_v30 }
 0xa74   :  { %vm1370_vm0 = vmor %vm1358_vm12, %vm1368_vm14  ;;  %v1395_v45 = vsel %vm1394_vm8, %v1392_v37, %v1389_v41  ;;  %v1329_v53 = vadd.f32 %v1328_v48, %v1327_v33 }
 0xa75   :  { %v1378_v42 = vsel %vm1370_vm0, %v1518_v39, %v1372_v35  ;;  %v1384_v43 = vsel %vm1370_vm0, %v1520_v40, %v1372_v35  ;;  %v1390_v44 = vsel %vm1370_vm0, %v1522_v38, %v1372_v35  ;;  %1398 = vst.msk [vmem:[%s2383_s25] sm:$0xff] %vm1397_vm15, %v1395_v45  ;;  %v1323_v54 = vrot.slane %v1322_v47, 1 }
 0xa76   :  { %1746 = vset.pattern.permute.xlu0 %v1824_v46  ;;  %1412 = vperm.xlu1 %1745, %v1378_v42   ;;  %v1393_v49 = vsel %vm1391_vm6, %v1378_v42, %v1384_v43  ;;  %v1330_v59 = vrot.slane %v1329_v53, 1 }
 0xa77   :  { %1425 = vperm.xlu0 %1746, %v1383_v36   ;;  %v1396_v11 = vsel %vm1394_vm8, %v1393_v49, %v1390_v44  ;;  %v1324_v58 = vadd.f32 %v1323_v54, %v1322_v47 }
 0xa78   :  { %1399 = vst.msk [vmem:[%s2383_s25 + $0x8] sm:$0xff] %vm1397_vm15, %v1396_v11  ;;  %v1331_v61 = vadd.f32 %v1330_v59, %v1329_v53  ;;  %s1791_s25 = scalar_lea.vmem %s1472_s17, 32 }
 0xa79   :  { %p1792_p0 = scmp.ne.s32.totalorder %s1472_s17, %s1791_s25  ;;  %p1797_p2 = scmp.lt.s32.totalorder %s1791_s25, %s1791_s25 }
 0xa7a   :  { %1747 = vset.pattern.permute.xlu1 %v1824_v46 }
 0xa7b   :  { %1750 = vset.pattern.permute.xlu0 %v1825_v55  ;;  %1430 = vperm.xlu1 %1747, %v1384_v43   ;;  %p1798_p3 = por %p1797_p2, %p1796_p1 }
 0xa7c   :  { %1448 = vperm.xlu0 %1750, %v1390_v44  }
 0xa7d   :  { %p1799_p4 = pnand %p1798_p3, %p1792_p0 }
 0xa7f   :  { %1748 = vset.pattern.permute.xlu1 %v1822_v4 }
 0xa80   :  { %1334 = vperm.xlu1 %1748, %v1324_v58  }
 0xa84   :  { %1338 = vperm.xlu1 %1748, %v1331_v61  }
 0xa88   :  { %1749 = vset.pattern.permute.xlu1 %v1825_v55 }
 0xa89   :  { %1443 = vperm.xlu1 %1749, %v1389_v41  }
 0xa8a   :  { %1802 = shalt.err (!%p1799_p4)
}
 0xa8b   :  { %s1803_s16 = scalar_lea.hbm %s2382_s24, 32 }
 0xa8c   :  { %p1804_p5 = scmp.ne.s32.totalorder %s2382_s24, %s1803_s16  ;;  %p1807_p6 = scmp.lt.u32.totalorder %s1803_s16, %s2382_s24 }
 0xa8e   :  { %p1809_p7 = pnand %p1807_p6, %p1804_p5 }
 0xa90   :  { %1812 = shalt.err (!%p1809_p7)
}
 0xa91   :  { %1474 = dma.vmem_to_hbm [thread:$0]  %s1472_s17, 32, %s2382_s24, [#allocation3]  }
 0xa92   :  { %s2419_s13 = sld [smem:[#allocation13_spill]]  ;;  %s2420_s7 = sld [smem:[#allocation6_spill]] }
 0xa98   :  { %v1523_v52 = vld [vmem:[%s2419_s13] ss:$0 sm:$0xff]  ;;  %v1404_v0 = vld [vmem:[%s2420_s7 + $0x8] sm:$0xff]  ;;  %v1525_v1 = vld [vmem:[%s2419_s13 + $0x2] ss:$0 sm:$0xff] }
 0xa99   :  { %v1524_v2 = vld [vmem:[%s2419_s13 + $0x1] ss:$0 sm:$0xff] }
 0xa9a   :  { %v1403_v17 = vld [vmem:[%s2420_s7] sm:$0xff] }
 0xaf1   :  { %v1408_v4 = vpop.permute.xlu0 %1407 }
 0xaf2   :  { %v1419_v15 = vmul.f32 %v1523_v52, %v1408_v4 }
 0xaf4   :  { %v1421_v19 = vadd.f32 %v1419_v15, %v1403_v17 }
 0xaf5   :  { %v1413_v62 = vpop.permute.xlu1 %1412 }
 0xaf6   :  { %v1426_v63 = vpop.permute.xlu0 %1425  ;;  %v1420_v51 = vmul.f32 %v1523_v52, %v1413_v62 }
 0xaf7   :  { %v1437_v56 = vmul.f32 %v1524_v2, %v1426_v63 }
 0xaf8   :  { %v1422_v7 = vadd.f32 %v1420_v51, %v1404_v0 }
 0xaf9   :  { %v1439_v21 = vadd.f32 %v1437_v56, %v1421_v19 }
 0xafa   :  { %v1431_v6 = vpop.permute.xlu1 %1430 }
 0xafb   :  { %v1438_v8 = vmul.f32 %v1524_v2, %v1431_v6  ;;  %v1449_v9 = vpop.permute.xlu0 %1448 }
 0xafc   :  { %v1456_v10 = vmul.f32 %v1525_v1, %v1449_v9 }
 0xafd   :  { %v1440_v12 = vadd.f32 %v1438_v8, %v1422_v7 }
 0xaff   :  { %v1458_v13 = vadd.f32 %v1456_v10, %v1440_v12  ;;  %v1335_v14 = vpop.permute.xlu1 %1334 }
 0xb01   :  { %1460 = vst.msk [vmem:[%s2384_s26 + $0x8] sm:$0xff] %vm100_vm1, %v1458_v13 }
 0xb03   :  { %v1339_v16 = vpop.permute.xlu1 %1338 }
 0xb04   :  { %v1340_v18 = vsel %vm657_vm3, %v1339_v16, %v1335_v14 }
 0xb05   :  { %1342 = vst.msk [vmem:[%s2385_s27] sm:$0x3] %vm286_vm2, %v1340_v18 }
 0xb08   :  { %v1444_v20 = vpop.permute.xlu1 %1443 }
 0xb09   :  { %v1455_v50 = vmul.f32 %v1525_v1, %v1444_v20 }
 0xb0b   :  { %v1457_v23 = vadd.f32 %v1455_v50, %v1439_v21 }
 0xb0d   :  { %1459 = vst.msk [vmem:[%s2384_s26] sm:$0xff] %vm100_vm1, %v1457_v23 }
 0xb0e   :  { %1813 = dma.done.wait [#allocation3], 32  }
 0xb0f   :  { %1814 = vsyncadd [#allocation3], 4294967264 }
 0xb10   :  { %1498 = vsyncpa [#allocation3], 1 }

</bundles_post_ra>
